<compile_context>
chip_gen: v6e
topology: v6e:2x2x1
jax: 0.10.0
libtpu: 0.0.40
codegen_flags: <defaults>
</compile_context>

<pallas_src>
import jax
import jax.numpy as jnp
from jax import lax
from jax.experimental import pallas as pl
from jax.experimental.pallas import tpu as pltpu


# ---------------------------------------------------------------------------
# Kernel A: fused conv1(1->32,3x3)+ReLU -> conv2(32->64,3x3)+ReLU -> maxpool2x2
# ---------------------------------------------------------------------------
_WPAD = 32          # padded flattened-row stride for the 26-wide conv1 output
_H1, _W1 = 26, 26   # conv1 output spatial size
_H2, _W2 = 24, 24   # conv2 output spatial size
_HP, _WP = 12, 12   # pooled output spatial size


def _conv_pool_kernel(p1_ref, w1_ref, b1_ref, w2_ref, b2_ref, o_ref, r1_ref):
    """One (batch, pooled-row) step: produces a [12, 64] pooled output row."""
    ph = pl.program_id(1)

    # conv1 (+bias+ReLU) for the 4 input rows feeding this pooled row.
    start = pl.multiple_of(ph * 2 * _WPAD, 2 * _WPAD)
    lhs1 = p1_ref[0, pl.ds(start, 4 * _WPAD), :]                  # [128, 9]
    r1 = jnp.dot(lhs1, w1_ref[...], preferred_element_type=jnp.float32)
    r1 = jnp.maximum(r1 + b1_ref[...], 0.0)                       # [128, 32]
    r1_ref[...] = r1

    # conv2 (+bias+ReLU) for output rows h = 2*ph, 2*ph+1.  The im2col is
    # fused: each 3x3 tap is a contiguous [24, 32] slice of the conv1 tile
    # feeding a small 2D MXU matmul, accumulated in f32.
    rows = []
    for a in range(2):
        acc = jnp.zeros((_W2, 64), jnp.float32)
        for i in range(3):
            for j in range(3):
                lhs = r1_ref[pl.ds((a + i) * _WPAD + j, _W2), :]  # [24, 32]
                acc = acc + jnp.dot(lhs, w2_ref[i * 3 + j],
                                    preferred_element_type=jnp.float32)
        rows.append(jnp.maximum(acc + b2_ref[...], 0.0))          # [24, 64]

    # 2x2 max pool: max over the two rows, then over column pairs.  The
    # column pairing uses tiny 0/1 selection matmuls so channels stay on
    # lanes (no strided / reshaped layouts).
    m = jnp.maximum(rows[0], rows[1])                             # [24, 64]
    r_idx = lax.broadcasted_iota(jnp.int32, (_WP, _W2), 0)
    c_idx = lax.broadcasted_iota(jnp.int32, (_WP, _W2), 1)
    sel_e = (c_idx == 2 * r_idx).astype(jnp.float32)
    sel_o = (c_idx == 2 * r_idx + 1).astype(jnp.float32)
    pooled = jnp.maximum(
        jnp.dot(sel_e, m, preferred_element_type=jnp.float32),
        jnp.dot(sel_o, m, preferred_element_type=jnp.float32))    # [12, 64]
    o_ref[...] = pooled[None, None]


def conv_pool(p1, w1m, b1, w2m, b2):
    """p1: [B, 26*32, 9] conv1 patches -> pooled activations [B, 12, 12, 64]."""
    B = p1.shape[0]
    return pl.pallas_call(
        _conv_pool_kernel,
        out_shape=jax.ShapeDtypeStruct((B, _HP, _WP, 64), jnp.float32),
        grid=(B, _HP),
        in_specs=[
            pl.BlockSpec((1, _H1 * _WPAD, 9), lambda b, ph: (b, 0, 0)),
            pl.BlockSpec((9, 32), lambda b, ph: (0, 0)),
            pl.BlockSpec((1, 32), lambda b, ph: (0, 0)),
            pl.BlockSpec((9, 32, 64), lambda b, ph: (0, 0, 0)),
            pl.BlockSpec((1, 64), lambda b, ph: (0, 0)),
        ],
        out_specs=pl.BlockSpec((1, 1, _WP, 64), lambda b, ph: (b, ph, 0, 0)),
        scratch_shapes=[pltpu.VMEM((4 * _WPAD, 32), jnp.float32)],
        compiler_params=pltpu.CompilerParams(
            dimension_semantics=("parallel", "parallel")),
    )(p1, w1m, b1, w2m, b2)


# ---------------------------------------------------------------------------
# Kernel B: fused fc1(9216->128)+ReLU -> fc2(128->10) -> log_softmax
# ---------------------------------------------------------------------------
def _fc_head_kernel(x_ref, w1_ref, b1_ref, w2_ref, b2_ref, o_ref, acc_ref):
    k = pl.program_id(0)

    @pl.when(k == 0)
    def _():
        acc_ref[...] = jnp.zeros_like(acc_ref)

    acc_ref[...] += jnp.dot(x_ref[...], w1_ref[...],
                            preferred_element_type=jnp.float32)

    @pl.when(k == pl.num_programs(0) - 1)
    def _():
        h = jnp.maximum(acc_ref[...] + b1_ref[...], 0.0)          # [B, 128]
        logits = jnp.dot(h, w2_ref[...],
                         preferred_element_type=jnp.float32) + b2_ref[...]
        mx = jnp.max(logits, axis=-1, keepdims=True)
        s = logits - mx
        lse = jnp.log(jnp.sum(jnp.exp(s), axis=-1, keepdims=True))
        o_ref[...] = (s - lse).astype(o_ref.dtype)


def fc_head(feat, w1, b1, w2, b2, *, tk=1152):
    B, K = feat.shape
    N1 = w1.shape[1]
    n_classes = w2.shape[1]
    assert K % tk == 0
    return pl.pallas_call(
        _fc_head_kernel,
        out_shape=jax.ShapeDtypeStruct((B, n_classes), jnp.float32),
        grid=(K // tk,),
        in_specs=[
            pl.BlockSpec((B, tk), lambda k: (0, k)),
            pl.BlockSpec((tk, N1), lambda k: (k, 0)),
            pl.BlockSpec((1, N1), lambda k: (0, 0)),
            pl.BlockSpec((N1, n_classes), lambda k: (0, 0)),
            pl.BlockSpec((1, n_classes), lambda k: (0, 0)),
        ],
        out_specs=pl.BlockSpec((B, n_classes), lambda k: (0, 0)),
        scratch_shapes=[pltpu.VMEM((B, N1), jnp.float32)],
        compiler_params=pltpu.CompilerParams(
            dimension_semantics=("arbitrary",)),
    )(feat, w1, b1, w2, b2)


# ------------------------------- host glue ---------------------------------
def conv1_patches(x):
    """x: [B,1,28,28] -> conv1 im2col patches [B, 26*32, 9] (W padded to 32)."""
    xs = x[:, 0]                                               # [B, 28, 28]
    B = xs.shape[0]
    cols = [xs[:, i:i + _H1, j:j + _W1] for i in range(3) for j in range(3)]
    p = jnp.stack(cols, axis=-1)                               # [B, 26, 26, 9]
    p = jnp.pad(p, ((0, 0), (0, 0), (0, _WPAD - _W1), (0, 0)))  # [B, 26, 32, 9]
    return p.reshape(B, _H1 * _WPAD, 9)


def prep_params(params):
    """One-time (outside jit) repack of the torch-layout weights."""
    w1 = params["conv1_w"]                       # [32, 1, 3, 3]
    w2 = params["conv2_w"]                       # [64, 32, 3, 3]
    fc1 = params["fc1_w"]                        # [128, 9216] (NCHW flatten)
    fc2 = params["fc2_w"]                        # [10, 128]
    # fc1 columns re-permuted from (c, h, w) to our NHWC (h, w, c) flatten
    # order, then stored pre-transposed as [K, N].
    fc1_nhwc = fc1.reshape(128, 64, _HP, _WP).transpose(0, 2, 3, 1)
    return {
        "w1m": w1.reshape(32, 9).T,                             # [9, 32]
        "b1": params["conv1_b"].reshape(1, 32),
        "w2m": jnp.transpose(w2, (2, 3, 1, 0)).reshape(9, 32, 64),
        "b2": params["conv2_b"].reshape(1, 64),
        "fc1_w": fc1_nhwc.reshape(128, 9216).T,                 # [9216, 128]
        "fc1_b": params["fc1_b"].reshape(1, 128),
        "fc2_w": fc2.T,                                         # [128, 10]
        "fc2_b": params["fc2_b"].reshape(1, 10),
    }


def net_forward(prepped, x):
    B = x.shape[0]
    p1 = conv1_patches(x)                                       # [B, 832, 9]
    pooled = conv_pool(p1, prepped["w1m"], prepped["b1"],
                       prepped["w2m"], prepped["b2"])           # [B,12,12,64]
    # dropout1 / dropout2: inference-mode identity (PyTorch eval semantics).
    feat = pooled.reshape(B, _HP * _WP * 64)                    # [B, 9216]
    return fc_head(feat, prepped["fc1_w"], prepped["fc1_b"],
                   prepped["fc2_w"], prepped["fc2_b"])          # [B, 10]


# ------------------------------- reference ---------------------------------
def net_forward_ref(params, x):
    """Pure-JAX reference for correctness checking (torch layouts)."""
    dn1 = lax.conv_dimension_numbers(x.shape, params["conv1_w"].shape,
                                     ("NCHW", "OIHW", "NCHW"))
    x = lax.conv_general_dilated(x, params["conv1_w"], (1, 1), "VALID",
                                 dimension_numbers=dn1,
                                 precision=lax.Precision.HIGHEST)
    x = jnp.maximum(x + params["conv1_b"][None, :, None, None], 0.0)
    dn2 = lax.conv_dimension_numbers(x.shape, params["conv2_w"].shape,
                                     ("NCHW", "OIHW", "NCHW"))
    x = lax.conv_general_dilated(x, params["conv2_w"], (1, 1), "VALID",
                                 dimension_numbers=dn2,
                                 precision=lax.Precision.HIGHEST)
    x = jnp.maximum(x + params["conv2_b"][None, :, None, None], 0.0)
    x = lax.reduce_window(x, -jnp.inf, lax.max, (1, 1, 2, 2), (1, 1, 2, 2),
                          "VALID")
    B = x.shape[0]
    x = x.reshape(B, -1)
    x = jnp.dot(x, params["fc1_w"].T,
                precision=lax.Precision.HIGHEST) + params["fc1_b"]
    x = jnp.maximum(x, 0.0)
    x = jnp.dot(x, params["fc2_w"].T,
                precision=lax.Precision.HIGHEST) + params["fc2_b"]
    return jax.nn.log_softmax(x, axis=1)


def init_params(key):
    ks = jax.random.split(key, 8)

    def u(k, shape, fan_in):
        bound = 1.0 / jnp.sqrt(jnp.float32(fan_in))
        return jax.random.uniform(k, shape, jnp.float32, -bound, bound)

    return {
        "conv1_w": u(ks[0], (32, 1, 3, 3), 9),
        "conv1_b": u(ks[1], (32,), 9),
        "conv2_w": u(ks[2], (64, 32, 3, 3), 32 * 9),
        "conv2_b": u(ks[3], (64,), 32 * 9),
        "fc1_w":   u(ks[4], (128, 9216), 9216),
        "fc1_b":   u(ks[5], (128,), 9216),
        "fc2_w":   u(ks[6], (10, 128), 128),
        "fc2_b":   u(ks[7], (10,), 128),
    }


if __name__ == "__main__":
    key = jax.random.PRNGKey(0)
    pkey, xkey = jax.random.split(key)
    params = init_params(pkey)
    prepped = prep_params(params)   # weight repack done once, outside jit
    # fc1 expects 9216 = 64*12*12 features, which forces 28x28 MNIST-shaped input.
    x = jax.random.normal(xkey, (2, 1, 28, 28), jnp.float32)

    out = jax.jit(net_forward)(prepped, x)
    out = jax.block_until_ready(out)

    ref = net_forward_ref(params, x)
    assert out.shape == (2, 10), out.shape
    max_err = float(jnp.max(jnp.abs(out - ref)))
    assert jnp.allclose(out, ref, atol=1e-3, rtol=1e-3), max_err
    print("KERNEL_OK")
</pallas_src>

<mosaic_0001>
module attributes {stable_mosaic.version = 11 : i64} {
  func.func @_conv_pool_kernel(%arg0: i32, %arg1: i32, %arg2: memref<1x832x9xf32, #tpu.memory_space<vmem>>, %arg3: memref<9x32xf32, #tpu.memory_space<vmem>>, %arg4: memref<1x32xf32, #tpu.memory_space<vmem>>, %arg5: memref<9x32x64xf32, #tpu.memory_space<vmem>>, %arg6: memref<1x64xf32, #tpu.memory_space<vmem>>, %arg7: memref<1x1x12x64xf32, #tpu.memory_space<vmem>>, %arg8: memref<128x32xf32, #tpu.memory_space<vmem>>) attributes {dimension_semantics = [#tpu.dimension_semantics<parallel>, #tpu.dimension_semantics<parallel>], iteration_bounds = array<i64: 2, 12>, scalar_prefetch = 0 : i64, scratch_operands = 1 : i64, tpu.core_type = #tpu.core_type<tc>, window_params = [{transform_indices = @transform_0, window_bounds = array<i64: 1, 832, 9>}, {pipeline_mode = #tpu.pipeline_mode<synchronous>, transform_indices = @transform_1, window_bounds = array<i64: 9, 32>}, {pipeline_mode = #tpu.pipeline_mode<synchronous>, transform_indices = @transform_2, window_bounds = array<i64: 1, 32>}, {pipeline_mode = #tpu.pipeline_mode<synchronous>, transform_indices = @transform_3, window_bounds = array<i64: 9, 32, 64>}, {pipeline_mode = #tpu.pipeline_mode<synchronous>, transform_indices = @transform_4, window_bounds = array<i64: 1, 64>}, {transform_indices = @transform_5, window_bounds = array<i64: 1, 1, 12, 64>}]} {
    %c2_i32 = arith.constant 2 : i32
    %0 = arith.muli %arg1, %c2_i32 : i32
    %c32_i32 = arith.constant 32 : i32
    %1 = arith.muli %0, %c32_i32 : i32
    %2 = tpu.assume_multiple %1, 64 : i32
    %c0 = arith.constant 0 : index
    %3 = arith.index_cast %2 : i32 to index
    %c0_0 = arith.constant 0 : index
    %4 = vector.load %arg2[%c0, %3, %c0_0] : memref<1x832x9xf32, #tpu.memory_space<vmem>>, vector<1x128x9xf32>
    %5 = vector.shape_cast %4 : vector<1x128x9xf32> to vector<128x9xf32>
    %c0_1 = arith.constant 0 : index
    %c0_2 = arith.constant 0 : index
    %6 = vector.load %arg3[%c0_1, %c0_2] : memref<9x32xf32, #tpu.memory_space<vmem>>, vector<9x32xf32>
    %cst = arith.constant dense<0.000000e+00> : vector<128x32xf32>
    %7 = tpu.matmul %5, %6, %cst {dimension_numbers = #tpu.dot_dimension_numbers<[1], [0], [0], [1], [0, 0, 1, 1], [], []>} : vector<128x9xf32>, vector<9x32xf32>, vector<128x32xf32> -> vector<128x32xf32>
    %c0_3 = arith.constant 0 : index
    %c0_4 = arith.constant 0 : index
    %8 = vector.load %arg4[%c0_3, %c0_4] : memref<1x32xf32, #tpu.memory_space<vmem>>, vector<1x32xf32>
    %9 = vector.broadcast %8 : vector<1x32xf32> to vector<128x32xf32>
    %10 = arith.addf %7, %9 : vector<128x32xf32>
    %cst_5 = arith.constant 0.000000e+00 : f32
    %11 = vector.broadcast %cst_5 : f32 to vector<128x32xf32>
    %12 = arith.maximumf %10, %11 : vector<128x32xf32>
    %c0_6 = arith.constant 0 : index
    %c0_7 = arith.constant 0 : index
    %13 = vector.load %arg8[%c0_6, %c0_7] : memref<128x32xf32, #tpu.memory_space<vmem>>, vector<128x32xf32>
    tpu.vector_store %arg8[%c0_6, %c0_7], %12 {strides = array<i32>} : memref<128x32xf32, #tpu.memory_space<vmem>>, vector<128x32xf32>,
    %cst_8 = arith.constant 0.000000e+00 : f32
    %14 = vector.broadcast %cst_8 : f32 to vector<24x64xf32>
    %c0_9 = arith.constant 0 : index
    %c0_10 = arith.constant 0 : index
    %15 = vector.load %arg8[%c0_9, %c0_10] : memref<128x32xf32, #tpu.memory_space<vmem>>, vector<24x32xf32>
    %c0_11 = arith.constant 0 : index
    %c0_12 = arith.constant 0 : index
    %c0_13 = arith.constant 0 : index
    %16 = vector.load %arg5[%c0_11, %c0_12, %c0_13] : memref<9x32x64xf32, #tpu.memory_space<vmem>>, vector<1x32x64xf32>
    %17 = vector.shape_cast %16 : vector<1x32x64xf32> to vector<32x64xf32>
    %cst_14 = arith.constant dense<0.000000e+00> : vector<24x64xf32>
    %18 = tpu.matmul %15, %17, %cst_14 {dimension_numbers = #tpu.dot_dimension_numbers<[1], [0], [0], [1], [0, 0, 1, 1], [], []>} : vector<24x32xf32>, vector<32x64xf32>, vector<24x64xf32> -> vector<24x64xf32>
    %19 = arith.addf %14, %18 : vector<24x64xf32>
    %c1 = arith.constant 1 : index
    %c0_15 = arith.constant 0 : index
    %20 = vector.load %arg8[%c1, %c0_15] : memref<128x32xf32, #tpu.memory_space<vmem>>, vector<24x32xf32>
    %c1_16 = arith.constant 1 : index
    %c0_17 = arith.constant 0 : index
    %c0_18 = arith.constant 0 : index
    %21 = vector.load %arg5[%c1_16, %c0_17, %c0_18] : memref<9x32x64xf32, #tpu.memory_space<vmem>>, vector<1x32x64xf32>
    %22 = vector.shape_cast %21 : vector<1x32x64xf32> to vector<32x64xf32>
    %cst_19 = arith.constant dense<0.000000e+00> : vector<24x64xf32>
    %23 = tpu.matmul %20, %22, %cst_19 {dimension_numbers = #tpu.dot_dimension_numbers<[1], [0], [0], [1], [0, 0, 1, 1], [], []>} : vector<24x32xf32>, vector<32x64xf32>, vector<24x64xf32> -> vector<24x64xf32>
    %24 = arith.addf %19, %23 : vector<24x64xf32>
    %c2 = arith.constant 2 : index
    %c0_20 = arith.constant 0 : index
    %25 = vector.load %arg8[%c2, %c0_20] : memref<128x32xf32, #tpu.memory_space<vmem>>, vector<24x32xf32>
    %c2_21 = arith.constant 2 : index
    %c0_22 = arith.constant 0 : index
    %c0_23 = arith.constant 0 : index
    %26 = vector.load %arg5[%c2_21, %c0_22, %c0_23] : memref<9x32x64xf32, #tpu.memory_space<vmem>>, vector<1x32x64xf32>
    %27 = vector.shape_cast %26 : vector<1x32x64xf32> to vector<32x64xf32>
    %cst_24 = arith.constant dense<0.000000e+00> : vector<24x64xf32>
    %28 = tpu.matmul %25, %27, %cst_24 {dimension_numbers = #tpu.dot_dimension_numbers<[1], [0], [0], [1], [0, 0, 1, 1], [], []>} : vector<24x32xf32>, vector<32x64xf32>, vector<24x64xf32> -> vector<24x64xf32>
    %29 = arith.addf %24, %28 : vector<24x64xf32>
    %c32 = arith.constant 32 : index
    %c0_25 = arith.constant 0 : index
    %30 = vector.load %arg8[%c32, %c0_25] : memref<128x32xf32, #tpu.memory_space<vmem>>, vector<24x32xf32>
    %c3 = arith.constant 3 : index
    %c0_26 = arith.constant 0 : index
    %c0_27 = arith.constant 0 : index
    %31 = vector.load %arg5[%c3, %c0_26, %c0_27] : memref<9x32x64xf32, #tpu.memory_space<vmem>>, vector<1x32x64xf32>
    %32 = vector.shape_cast %31 : vector<1x32x64xf32> to vector<32x64xf32>
    %cst_28 = arith.constant dense<0.000000e+00> : vector<24x64xf32>
    %33 = tpu.matmul %30, %32, %cst_28 {dimension_numbers = #tpu.dot_dimension_numbers<[1], [0], [0], [1], [0, 0, 1, 1], [], []>} : vector<24x32xf32>, vector<32x64xf32>, vector<24x64xf32> -> vector<24x64xf32>
    %34 = arith.addf %29, %33 : vector<24x64xf32>
    %c33 = arith.constant 33 : index
    %c0_29 = arith.constant 0 : index
    %35 = vector.load %arg8[%c33, %c0_29] : memref<128x32xf32, #tpu.memory_space<vmem>>, vector<24x32xf32>
    %c4 = arith.constant 4 : index
    %c0_30 = arith.constant 0 : index
    %c0_31 = arith.constant 0 : index
    %36 = vector.load %arg5[%c4, %c0_30, %c0_31] : memref<9x32x64xf32, #tpu.memory_space<vmem>>, vector<1x32x64xf32>
    %37 = vector.shape_cast %36 : vector<1x32x64xf32> to vector<32x64xf32>
    %cst_32 = arith.constant dense<0.000000e+00> : vector<24x64xf32>
    %38 = tpu.matmul %35, %37, %cst_32 {dimension_numbers = #tpu.dot_dimension_numbers<[1], [0], [0], [1], [0, 0, 1, 1], [], []>} : vector<24x32xf32>, vector<32x64xf32>, vector<24x64xf32> -> vector<24x64xf32>
    %39 = arith.addf %34, %38 : vector<24x64xf32>
    %c34 = arith.constant 34 : index
    %c0_33 = arith.constant 0 : index
    %40 = vector.load %arg8[%c34, %c0_33] : memref<128x32xf32, #tpu.memory_space<vmem>>, vector<24x32xf32>
    %c5 = arith.constant 5 : index
    %c0_34 = arith.constant 0 : index
    %c0_35 = arith.constant 0 : index
    %41 = vector.load %arg5[%c5, %c0_34, %c0_35] : memref<9x32x64xf32, #tpu.memory_space<vmem>>, vector<1x32x64xf32>
    %42 = vector.shape_cast %41 : vector<1x32x64xf32> to vector<32x64xf32>
    %cst_36 = arith.constant dense<0.000000e+00> : vector<24x64xf32>
    %43 = tpu.matmul %40, %42, %cst_36 {dimension_numbers = #tpu.dot_dimension_numbers<[1], [0], [0], [1], [0, 0, 1, 1], [], []>} : vector<24x32xf32>, vector<32x64xf32>, vector<24x64xf32> -> vector<24x64xf32>
    %44 = arith.addf %39, %43 : vector<24x64xf32>
    %c64 = arith.constant 64 : index
    %c0_37 = arith.constant 0 : index
    %45 = vector.load %arg8[%c64, %c0_37] : memref<128x32xf32, #tpu.memory_space<vmem>>, vector<24x32xf32>
    %c6 = arith.constant 6 : index
    %c0_38 = arith.constant 0 : index
    %c0_39 = arith.constant 0 : index
    %46 = vector.load %arg5[%c6, %c0_38, %c0_39] : memref<9x32x64xf32, #tpu.memory_space<vmem>>, vector<1x32x64xf32>
    %47 = vector.shape_cast %46 : vector<1x32x64xf32> to vector<32x64xf32>
    %cst_40 = arith.constant dense<0.000000e+00> : vector<24x64xf32>
    %48 = tpu.matmul %45, %47, %cst_40 {dimension_numbers = #tpu.dot_dimension_numbers<[1], [0], [0], [1], [0, 0, 1, 1], [], []>} : vector<24x32xf32>, vector<32x64xf32>, vector<24x64xf32> -> vector<24x64xf32>
    %49 = arith.addf %44, %48 : vector<24x64xf32>
    %c65 = arith.constant 65 : index
    %c0_41 = arith.constant 0 : index
    %50 = vector.load %arg8[%c65, %c0_41] : memref<128x32xf32, #tpu.memory_space<vmem>>, vector<24x32xf32>
    %c7 = arith.constant 7 : index
    %c0_42 = arith.constant 0 : index
    %c0_43 = arith.constant 0 : index
    %51 = vector.load %arg5[%c7, %c0_42, %c0_43] : memref<9x32x64xf32, #tpu.memory_space<vmem>>, vector<1x32x64xf32>
    %52 = vector.shape_cast %51 : vector<1x32x64xf32> to vector<32x64xf32>
    %cst_44 = arith.constant dense<0.000000e+00> : vector<24x64xf32>
    %53 = tpu.matmul %50, %52, %cst_44 {dimension_numbers = #tpu.dot_dimension_numbers<[1], [0], [0], [1], [0, 0, 1, 1], [], []>} : vector<24x32xf32>, vector<32x64xf32>, vector<24x64xf32> -> vector<24x64xf32>
    %54 = arith.addf %49, %53 : vector<24x64xf32>
    %c66 = arith.constant 66 : index
    %c0_45 = arith.constant 0 : index
    %55 = vector.load %arg8[%c66, %c0_45] : memref<128x32xf32, #tpu.memory_space<vmem>>, vector<24x32xf32>
    %c8 = arith.constant 8 : index
    %c0_46 = arith.constant 0 : index
    %c0_47 = arith.constant 0 : index
    %56 = vector.load %arg5[%c8, %c0_46, %c0_47] : memref<9x32x64xf32, #tpu.memory_space<vmem>>, vector<1x32x64xf32>
    %57 = vector.shape_cast %56 : vector<1x32x64xf32> to vector<32x64xf32>
    %cst_48 = arith.constant dense<0.000000e+00> : vector<24x64xf32>
    %58 = tpu.matmul %55, %57, %cst_48 {dimension_numbers = #tpu.dot_dimension_numbers<[1], [0], [0], [1], [0, 0, 1, 1], [], []>} : vector<24x32xf32>, vector<32x64xf32>, vector<24x64xf32> -> vector<24x64xf32>
    %59 = arith.addf %54, %58 : vector<24x64xf32>
    %c0_49 = arith.constant 0 : index
    %c0_50 = arith.constant 0 : index
    %60 = vector.load %arg6[%c0_49, %c0_50] : memref<1x64xf32, #tpu.memory_space<vmem>>, vector<1x64xf32>
    %61 = vector.broadcast %60 : vector<1x64xf32> to vector<24x64xf32>
    %62 = arith.addf %59, %61 : vector<24x64xf32>
    %cst_51 = arith.constant 0.000000e+00 : f32
    %63 = vector.broadcast %cst_51 : f32 to vector<24x64xf32>
    %64 = arith.maximumf %62, %63 : vector<24x64xf32>
    %cst_52 = arith.constant 0.000000e+00 : f32
    %65 = vector.broadcast %cst_52 : f32 to vector<24x64xf32>
    %c32_53 = arith.constant 32 : index
    %c0_54 = arith.constant 0 : index
    %66 = vector.load %arg8[%c32_53, %c0_54] : memref<128x32xf32, #tpu.memory_space<vmem>>, vector<24x32xf32>
    %c0_55 = arith.constant 0 : index
    %c0_56 = arith.constant 0 : index
    %c0_57 = arith.constant 0 : index
    %67 = vector.load %arg5[%c0_55, %c0_56, %c0_57] : memref<9x32x64xf32, #tpu.memory_space<vmem>>, vector<1x32x64xf32>
    %68 = vector.shape_cast %67 : vector<1x32x64xf32> to vector<32x64xf32>
    %cst_58 = arith.constant dense<0.000000e+00> : vector<24x64xf32>
    %69 = tpu.matmul %66, %68, %cst_58 {dimension_numbers = #tpu.dot_dimension_numbers<[1], [0], [0], [1], [0, 0, 1, 1], [], []>} : vector<24x32xf32>, vector<32x64xf32>, vector<24x64xf32> -> vector<24x64xf32>
    %70 = arith.addf %65, %69 : vector<24x64xf32>
    %c33_59 = arith.constant 33 : index
    %c0_60 = arith.constant 0 : index
    %71 = vector.load %arg8[%c33_59, %c0_60] : memref<128x32xf32, #tpu.memory_space<vmem>>, vector<24x32xf32>
    %c1_61 = arith.constant 1 : index
    %c0_62 = arith.constant 0 : index
    %c0_63 = arith.constant 0 : index
    %72 = vector.load %arg5[%c1_61, %c0_62, %c0_63] : memref<9x32x64xf32, #tpu.memory_space<vmem>>, vector<1x32x64xf32>
    %73 = vector.shape_cast %72 : vector<1x32x64xf32> to vector<32x64xf32>
    %cst_64 = arith.constant dense<0.000000e+00> : vector<24x64xf32>
    %74 = tpu.matmul %71, %73, %cst_64 {dimension_numbers = #tpu.dot_dimension_numbers<[1], [0], [0], [1], [0, 0, 1, 1], [], []>} : vector<24x32xf32>, vector<32x64xf32>, vector<24x64xf32> -> vector<24x64xf32>
    %75 = arith.addf %70, %74 : vector<24x64xf32>
    %c34_65 = arith.constant 34 : index
    %c0_66 = arith.constant 0 : index
    %76 = vector.load %arg8[%c34_65, %c0_66] : memref<128x32xf32, #tpu.memory_space<vmem>>, vector<24x32xf32>
    %c2_67 = arith.constant 2 : index
    %c0_68 = arith.constant 0 : index
    %c0_69 = arith.constant 0 : index
    %77 = vector.load %arg5[%c2_67, %c0_68, %c0_69] : memref<9x32x64xf32, #tpu.memory_space<vmem>>, vector<1x32x64xf32>
    %78 = vector.shape_cast %77 : vector<1x32x64xf32> to vector<32x64xf32>
    %cst_70 = arith.constant dense<0.000000e+00> : vector<24x64xf32>
    %79 = tpu.matmul %76, %78, %cst_70 {dimension_numbers = #tpu.dot_dimension_numbers<[1], [0], [0], [1], [0, 0, 1, 1], [], []>} : vector<24x32xf32>, vector<32x64xf32>, vector<24x64xf32> -> vector<24x64xf32>
    %80 = arith.addf %75, %79 : vector<24x64xf32>
    %c64_71 = arith.constant 64 : index
    %c0_72 = arith.constant 0 : index
    %81 = vector.load %arg8[%c64_71, %c0_72] : memref<128x32xf32, #tpu.memory_space<vmem>>, vector<24x32xf32>
    %c3_73 = arith.constant 3 : index
    %c0_74 = arith.constant 0 : index
    %c0_75 = arith.constant 0 : index
    %82 = vector.load %arg5[%c3_73, %c0_74, %c0_75] : memref<9x32x64xf32, #tpu.memory_space<vmem>>, vector<1x32x64xf32>
    %83 = vector.shape_cast %82 : vector<1x32x64xf32> to vector<32x64xf32>
    %cst_76 = arith.constant dense<0.000000e+00> : vector<24x64xf32>
    %84 = tpu.matmul %81, %83, %cst_76 {dimension_numbers = #tpu.dot_dimension_numbers<[1], [0], [0], [1], [0, 0, 1, 1], [], []>} : vector<24x32xf32>, vector<32x64xf32>, vector<24x64xf32> -> vector<24x64xf32>
    %85 = arith.addf %80, %84 : vector<24x64xf32>
    %c65_77 = arith.constant 65 : index
    %c0_78 = arith.constant 0 : index
    %86 = vector.load %arg8[%c65_77, %c0_78] : memref<128x32xf32, #tpu.memory_space<vmem>>, vector<24x32xf32>
    %c4_79 = arith.constant 4 : index
    %c0_80 = arith.constant 0 : index
    %c0_81 = arith.constant 0 : index
    %87 = vector.load %arg5[%c4_79, %c0_80, %c0_81] : memref<9x32x64xf32, #tpu.memory_space<vmem>>, vector<1x32x64xf32>
    %88 = vector.shape_cast %87 : vector<1x32x64xf32> to vector<32x64xf32>
    %cst_82 = arith.constant dense<0.000000e+00> : vector<24x64xf32>
    %89 = tpu.matmul %86, %88, %cst_82 {dimension_numbers = #tpu.dot_dimension_numbers<[1], [0], [0], [1], [0, 0, 1, 1], [], []>} : vector<24x32xf32>, vector<32x64xf32>, vector<24x64xf32> -> vector<24x64xf32>
    %90 = arith.addf %85, %89 : vector<24x64xf32>
    %c66_83 = arith.constant 66 : index
    %c0_84 = arith.constant 0 : index
    %91 = vector.load %arg8[%c66_83, %c0_84] : memref<128x32xf32, #tpu.memory_space<vmem>>, vector<24x32xf32>
    %c5_85 = arith.constant 5 : index
    %c0_86 = arith.constant 0 : index
    %c0_87 = arith.constant 0 : index
    %92 = vector.load %arg5[%c5_85, %c0_86, %c0_87] : memref<9x32x64xf32, #tpu.memory_space<vmem>>, vector<1x32x64xf32>
    %93 = vector.shape_cast %92 : vector<1x32x64xf32> to vector<32x64xf32>
    %cst_88 = arith.constant dense<0.000000e+00> : vector<24x64xf32>
    %94 = tpu.matmul %91, %93, %cst_88 {dimension_numbers = #tpu.dot_dimension_numbers<[1], [0], [0], [1], [0, 0, 1, 1], [], []>} : vector<24x32xf32>, vector<32x64xf32>, vector<24x64xf32> -> vector<24x64xf32>
    %95 = arith.addf %90, %94 : vector<24x64xf32>
    %c96 = arith.constant 96 : index
    %c0_89 = arith.constant 0 : index
    %96 = vector.load %arg8[%c96, %c0_89] : memref<128x32xf32, #tpu.memory_space<vmem>>, vector<24x32xf32>
    %c6_90 = arith.constant 6 : index
    %c0_91 = arith.constant 0 : index
    %c0_92 = arith.constant 0 : index
    %97 = vector.load %arg5[%c6_90, %c0_91, %c0_92] : memref<9x32x64xf32, #tpu.memory_space<vmem>>, vector<1x32x64xf32>
    %98 = vector.shape_cast %97 : vector<1x32x64xf32> to vector<32x64xf32>
    %cst_93 = arith.constant dense<0.000000e+00> : vector<24x64xf32>
    %99 = tpu.matmul %96, %98, %cst_93 {dimension_numbers = #tpu.dot_dimension_numbers<[1], [0], [0], [1], [0, 0, 1, 1], [], []>} : vector<24x32xf32>, vector<32x64xf32>, vector<24x64xf32> -> vector<24x64xf32>
    %100 = arith.addf %95, %99 : vector<24x64xf32>
    %c97 = arith.constant 97 : index
    %c0_94 = arith.constant 0 : index
    %101 = vector.load %arg8[%c97, %c0_94] : memref<128x32xf32, #tpu.memory_space<vmem>>, vector<24x32xf32>
    %c7_95 = arith.constant 7 : index
    %c0_96 = arith.constant 0 : index
    %c0_97 = arith.constant 0 : index
    %102 = vector.load %arg5[%c7_95, %c0_96, %c0_97] : memref<9x32x64xf32, #tpu.memory_space<vmem>>, vector<1x32x64xf32>
    %103 = vector.shape_cast %102 : vector<1x32x64xf32> to vector<32x64xf32>
    %cst_98 = arith.constant dense<0.000000e+00> : vector<24x64xf32>
    %104 = tpu.matmul %101, %103, %cst_98 {dimension_numbers = #tpu.dot_dimension_numbers<[1], [0], [0], [1], [0, 0, 1, 1], [], []>} : vector<24x32xf32>, vector<32x64xf32>, vector<24x64xf32> -> vector<24x64xf32>
    %105 = arith.addf %100, %104 : vector<24x64xf32>
    %c98 = arith.constant 98 : index
    %c0_99 = arith.constant 0 : index
    %106 = vector.load %arg8[%c98, %c0_99] : memref<128x32xf32, #tpu.memory_space<vmem>>, vector<24x32xf32>
    %c8_100 = arith.constant 8 : index
    %c0_101 = arith.constant 0 : index
    %c0_102 = arith.constant 0 : index
    %107 = vector.load %arg5[%c8_100, %c0_101, %c0_102] : memref<9x32x64xf32, #tpu.memory_space<vmem>>, vector<1x32x64xf32>
    %108 = vector.shape_cast %107 : vector<1x32x64xf32> to vector<32x64xf32>
    %cst_103 = arith.constant dense<0.000000e+00> : vector<24x64xf32>
    %109 = tpu.matmul %106, %108, %cst_103 {dimension_numbers = #tpu.dot_dimension_numbers<[1], [0], [0], [1], [0, 0, 1, 1], [], []>} : vector<24x32xf32>, vector<32x64xf32>, vector<24x64xf32> -> vector<24x64xf32>
    %110 = arith.addf %105, %109 : vector<24x64xf32>
    %c0_104 = arith.constant 0 : index
    %c0_105 = arith.constant 0 : index
    %111 = vector.load %arg6[%c0_104, %c0_105] : memref<1x64xf32, #tpu.memory_space<vmem>>, vector<1x64xf32>
    %112 = vector.broadcast %111 : vector<1x64xf32> to vector<24x64xf32>
    %113 = arith.addf %110, %112 : vector<24x64xf32>
    %cst_106 = arith.constant 0.000000e+00 : f32
    %114 = vector.broadcast %cst_106 : f32 to vector<24x64xf32>
    %115 = arith.maximumf %113, %114 : vector<24x64xf32>
    %116 = arith.maximumf %64, %115 : vector<24x64xf32>
    %117 = tpu.iota {dimensions = array<i32: 0>} : vector<12x24xi32>
    %118 = tpu.iota {dimensions = array<i32: 1>} : vector<12x24xi32>
    %c2_i32_107 = arith.constant 2 : i32
    %119 = vector.broadcast %c2_i32_107 : i32 to vector<12x24xi32>
    %120 = arith.muli %119, %117 : vector<12x24xi32>
    %121 = arith.cmpi eq, %118, %120 : vector<12x24xi32>
    %122 = arith.extui %121 : vector<12x24xi1> to vector<12x24xi32>
    %123 = arith.sitofp %122 : vector<12x24xi32> to vector<12x24xf32>
    %c2_i32_108 = arith.constant 2 : i32
    %124 = vector.broadcast %c2_i32_108 : i32 to vector<12x24xi32>
    %125 = arith.muli %124, %117 : vector<12x24xi32>
    %c1_i32 = arith.constant 1 : i32
    %126 = vector.broadcast %c1_i32 : i32 to vector<12x24xi32>
    %127 = arith.addi %125, %126 : vector<12x24xi32>
    %128 = arith.cmpi eq, %118, %127 : vector<12x24xi32>
    %129 = arith.extui %128 : vector<12x24xi1> to vector<12x24xi32>
    %130 = arith.sitofp %129 : vector<12x24xi32> to vector<12x24xf32>
    %cst_109 = arith.constant dense<0.000000e+00> : vector<12x64xf32>
    %131 = tpu.matmul %123, %116, %cst_109 {dimension_numbers = #tpu.dot_dimension_numbers<[1], [0], [0], [1], [0, 0, 1, 1], [], []>} : vector<12x24xf32>, vector<24x64xf32>, vector<12x64xf32> -> vector<12x64xf32>
    %cst_110 = arith.constant dense<0.000000e+00> : vector<12x64xf32>
    %132 = tpu.matmul %130, %116, %cst_110 {dimension_numbers = #tpu.dot_dimension_numbers<[1], [0], [0], [1], [0, 0, 1, 1], [], []>} : vector<12x24xf32>, vector<24x64xf32>, vector<12x64xf32> -> vector<12x64xf32>
    %133 = arith.maximumf %131, %132 : vector<12x64xf32>
    %134 = vector.shape_cast %133 : vector<12x64xf32> to vector<1x1x12x64xf32>
    %c0_111 = arith.constant 0 : index
    %c0_112 = arith.constant 0 : index
    %c0_113 = arith.constant 0 : index
    %c0_114 = arith.constant 0 : index
    %135 = vector.load %arg7[%c0_111, %c0_112, %c0_113, %c0_114] : memref<1x1x12x64xf32, #tpu.memory_space<vmem>>, vector<1x1x12x64xf32>
    tpu.vector_store %arg7[%c0_111, %c0_112, %c0_113, %c0_114], %134 {strides = array<i32>} : memref<1x1x12x64xf32, #tpu.memory_space<vmem>>, vector<1x1x12x64xf32>,
    return
  }
  func.func @transform_0(%arg0: i32, %arg1: i32) -> (i32, i32, i32) {
    %c0_i32 = arith.constant 0 : i32
    %c0_i32_0 = arith.constant 0 : i32
    %c0_i32_1 = arith.constant 0 : i32
    return %arg0, %c0_i32, %c0_i32_0 : i32, i32, i32
  }
  func.func @transform_1(%arg0: i32, %arg1: i32) -> (i32, i32) {
    %c0_i32 = arith.constant 0 : i32
    %c0_i32_0 = arith.constant 0 : i32
    %c0_i32_1 = arith.constant 0 : i32
    return %c0_i32, %c0_i32_0 : i32, i32
  }
  func.func @transform_2(%arg0: i32, %arg1: i32) -> (i32, i32) {
    %c0_i32 = arith.constant 0 : i32
    %c0_i32_0 = arith.constant 0 : i32
    %c0_i32_1 = arith.constant 0 : i32
    return %c0_i32, %c0_i32_0 : i32, i32
  }
  func.func @transform_3(%arg0: i32, %arg1: i32) -> (i32, i32, i32) {
    %c0_i32 = arith.constant 0 : i32
    %c0_i32_0 = arith.constant 0 : i32
    %c0_i32_1 = arith.constant 0 : i32
    %c0_i32_2 = arith.constant 0 : i32
    return %c0_i32, %c0_i32_0, %c0_i32_1 : i32, i32, i32
  }
  func.func @transform_4(%arg0: i32, %arg1: i32) -> (i32, i32) {
    %c0_i32 = arith.constant 0 : i32
    %c0_i32_0 = arith.constant 0 : i32
    %c0_i32_1 = arith.constant 0 : i32
    return %c0_i32, %c0_i32_0 : i32, i32
  }
  func.func @transform_5(%arg0: i32, %arg1: i32) -> (i32, i32, i32, i32) {
    %c0_i32 = arith.constant 0 : i32
    %c0_i32_0 = arith.constant 0 : i32
    %c0_i32_1 = arith.constant 0 : i32
    return %arg0, %arg1, %c0_i32, %c0_i32_0 : i32, i32, i32, i32
  }
}

module attributes {stable_mosaic.version = 11 : i64} {
  func.func @_fc_head_kernel(%arg0: i32, %arg1: memref<2x1152xf32, #tpu.memory_space<vmem>>, %arg2: memref<1152x128xf32, #tpu.memory_space<vmem>>, %arg3: memref<1x128xf32, #tpu.memory_space<vmem>>, %arg4: memref<128x10xf32, #tpu.memory_space<vmem>>, %arg5: memref<1x10xf32, #tpu.memory_space<vmem>>, %arg6: memref<2x10xf32, #tpu.memory_space<vmem>>, %arg7: memref<2x128xf32, #tpu.memory_space<vmem>>) attributes {dimension_semantics = [#tpu.dimension_semantics<arbitrary>], iteration_bounds = array<i64: 8>, scalar_prefetch = 0 : i64, scratch_operands = 1 : i64, tpu.core_type = #tpu.core_type<tc>, window_params = [{transform_indices = @transform_0, window_bounds = array<i64: 2, 1152>}, {transform_indices = @transform_1, window_bounds = array<i64: 1152, 128>}, {pipeline_mode = #tpu.pipeline_mode<synchronous>, transform_indices = @transform_2, window_bounds = array<i64: 1, 128>}, {pipeline_mode = #tpu.pipeline_mode<synchronous>, transform_indices = @transform_3, window_bounds = array<i64: 128, 10>}, {pipeline_mode = #tpu.pipeline_mode<synchronous>, transform_indices = @transform_4, window_bounds = array<i64: 1, 10>}, {pipeline_mode = #tpu.pipeline_mode<synchronous>, transform_indices = @transform_5, window_bounds = array<i64: 2, 10>}]} {
    %c0_i32 = arith.constant 0 : i32
    %0 = arith.cmpi eq, %arg0, %c0_i32 : i32
    %1 = arith.extui %0 : i1 to i32
    %c0_i32_0 = arith.constant 0 : i32
    %2 = arith.cmpi ne, %1, %c0_i32_0 : i32
    scf.if %2 {
      %cst_9 = arith.constant 0.000000e+00 : f32
      %12 = vector.broadcast %cst_9 : f32 to vector<2x128xf32>
      %c0_10 = arith.constant 0 : index
      %c0_11 = arith.constant 0 : index
      %13 = vector.load %arg7[%c0_10, %c0_11] : memref<2x128xf32, #tpu.memory_space<vmem>>, vector<2x128xf32>
      tpu.vector_store %arg7[%c0_10, %c0_11], %12 {strides = array<i32>} : memref<2x128xf32, #tpu.memory_space<vmem>>, vector<2x128xf32>,
    } else {
    }
    %c0 = arith.constant 0 : index
    %c0_1 = arith.constant 0 : index
    %3 = vector.load %arg7[%c0, %c0_1] : memref<2x128xf32, #tpu.memory_space<vmem>>, vector<2x128xf32>
    %c0_2 = arith.constant 0 : index
    %c0_3 = arith.constant 0 : index
    %4 = vector.load %arg1[%c0_2, %c0_3] : memref<2x1152xf32, #tpu.memory_space<vmem>>, vector<2x1152xf32>
    %c0_4 = arith.constant 0 : index
    %c0_5 = arith.constant 0 : index
    %5 = vector.load %arg2[%c0_4, %c0_5] : memref<1152x128xf32, #tpu.memory_space<vmem>>, vector<1152x128xf32>
    %cst = arith.constant dense<0.000000e+00> : vector<2x128xf32>
    %6 = tpu.matmul %4, %5, %cst {dimension_numbers = #tpu.dot_dimension_numbers<[1], [0], [0], [1], [0, 0, 1, 1], [], []>} : vector<2x1152xf32>, vector<1152x128xf32>, vector<2x128xf32> -> vector<2x128xf32>
    %7 = arith.addf %3, %6 : vector<2x128xf32>
    %c0_6 = arith.constant 0 : index
    %c0_7 = arith.constant 0 : index
    %8 = vector.load %arg7[%c0_6, %c0_7] : memref<2x128xf32, #tpu.memory_space<vmem>>, vector<2x128xf32>
    tpu.vector_store %arg7[%c0_6, %c0_7], %7 {strides = array<i32>} : memref<2x128xf32, #tpu.memory_space<vmem>>, vector<2x128xf32>,
    %c7_i32 = arith.constant 7 : i32
    %9 = arith.cmpi eq, %arg0, %c7_i32 : i32
    %10 = arith.extui %9 : i1 to i32
    %c0_i32_8 = arith.constant 0 : i32
    %11 = arith.cmpi ne, %10, %c0_i32_8 : i32
    scf.if %11 {
      %c0_9 = arith.constant 0 : index
      %c0_10 = arith.constant 0 : index
      %12 = vector.load %arg7[%c0_9, %c0_10] : memref<2x128xf32, #tpu.memory_space<vmem>>, vector<2x128xf32>
      %c0_11 = arith.constant 0 : index
      %c0_12 = arith.constant 0 : index
      %13 = vector.load %arg3[%c0_11, %c0_12] : memref<1x128xf32, #tpu.memory_space<vmem>>, vector<1x128xf32>
      %14 = vector.broadcast %13 : vector<1x128xf32> to vector<2x128xf32>
      %15 = arith.addf %12, %14 : vector<2x128xf32>
      %cst_13 = arith.constant 0.000000e+00 : f32
      %16 = vector.broadcast %cst_13 : f32 to vector<2x128xf32>
      %17 = arith.maximumf %15, %16 : vector<2x128xf32>
      %c0_14 = arith.constant 0 : index
      %c0_15 = arith.constant 0 : index
      %18 = vector.load %arg4[%c0_14, %c0_15] : memref<128x10xf32, #tpu.memory_space<vmem>>, vector<128x10xf32>
      %cst_16 = arith.constant dense<0.000000e+00> : vector<2x10xf32>
      %19 = tpu.matmul %17, %18, %cst_16 {dimension_numbers = #tpu.dot_dimension_numbers<[1], [0], [0], [1], [0, 0, 1, 1], [], []>} : vector<2x128xf32>, vector<128x10xf32>, vector<2x10xf32> -> vector<2x10xf32>
      %c0_17 = arith.constant 0 : index
      %c0_18 = arith.constant 0 : index
      %20 = vector.load %arg5[%c0_17, %c0_18] : memref<1x10xf32, #tpu.memory_space<vmem>>, vector<1x10xf32>
      %21 = vector.broadcast %20 : vector<1x10xf32> to vector<2x10xf32>
      %22 = arith.addf %19, %21 : vector<2x10xf32>
      %cst_19 = arith.constant dense<0xFF800000> : vector<2xf32>
      %23 = vector.multi_reduction <maximumf>, %22, %cst_19 [1] : vector<2x10xf32> to vector<2xf32>
      %24 = vector.shape_cast %23 : vector<2xf32> to vector<2x1xf32>
      %25 = vector.broadcast %24 : vector<2x1xf32> to vector<2x10xf32>
      %26 = arith.subf %22, %25 : vector<2x10xf32>
      %27 = math.exp %26 : vector<2x10xf32>
      %cst_20 = arith.constant dense<0.000000e+00> : vector<2xf32>
      %28 = vector.multi_reduction <add>, %27, %cst_20 [1] : vector<2x10xf32> to vector<2xf32>
      %29 = vector.shape_cast %28 : vector<2xf32> to vector<2x1xf32>
      %30 = math.log %29 : vector<2x1xf32>
      %31 = vector.broadcast %30 : vector<2x1xf32> to vector<2x10xf32>
      %32 = arith.subf %26, %31 : vector<2x10xf32>
      %c0_21 = arith.constant 0 : index
      %c0_22 = arith.constant 0 : index
      %33 = vector.load %arg6[%c0_21, %c0_22] : memref<2x10xf32, #tpu.memory_space<vmem>>, vector<2x10xf32>
      tpu.vector_store %arg6[%c0_21, %c0_22], %32 {strides = array<i32>} : memref<2x10xf32, #tpu.memory_space<vmem>>, vector<2x10xf32>,
    } else {
    }
    return
  }
  func.func @transform_0(%arg0: i32) -> (i32, i32) {
    %c0_i32 = arith.constant 0 : i32
    %c0_i32_0 = arith.constant 0 : i32
    return %c0_i32, %arg0 : i32, i32
  }
  func.func @transform_1(%arg0: i32) -> (i32, i32) {
    %c0_i32 = arith.constant 0 : i32
    %c0_i32_0 = arith.constant 0 : i32
    return %arg0, %c0_i32 : i32, i32
  }
  func.func @transform_2(%arg0: i32) -> (i32, i32) {
    %c0_i32 = arith.constant 0 : i32
    %c0_i32_0 = arith.constant 0 : i32
    %c0_i32_1 = arith.constant 0 : i32
    return %c0_i32, %c0_i32_0 : i32, i32
  }
  func.func @transform_3(%arg0: i32) -> (i32, i32) {
    %c0_i32 = arith.constant 0 : i32
    %c0_i32_0 = arith.constant 0 : i32
    %c0_i32_1 = arith.constant 0 : i32
    return %c0_i32, %c0_i32_0 : i32, i32
  }
  func.func @transform_4(%arg0: i32) -> (i32, i32) {
    %c0_i32 = arith.constant 0 : i32
    %c0_i32_0 = arith.constant 0 : i32
    %c0_i32_1 = arith.constant 0 : i32
    return %c0_i32, %c0_i32_0 : i32, i32
  }
  func.func @transform_5(%arg0: i32) -> (i32, i32) {
    %c0_i32 = arith.constant 0 : i32
    %c0_i32_0 = arith.constant 0 : i32
    %c0_i32_1 = arith.constant 0 : i32
    return %c0_i32, %c0_i32_0 : i32, i32
  }
}

</mosaic_0001>

<bundles_post_ra>
// kernel: net_forward.2
= control target key start
LH: loop header
LB: loop body
LE: loop exit
PB: predicated region body
PF: predicated region fallthrough
CT: control target
= control target key end

     0   :  { %10 = vsyncpa [#allocation4], 0  ;;  %s4140_s0 = inlined_call_operand.vmem [shape: f32[2,832,9], index: 0, kind: input, shape index: {}]   ;;  %s4141_s1 = inlined_call_operand.hbm [shape: f32[9,32], index: 1, kind: input, shape index: {}]   ;;  %s4142_s2 = inlined_call_operand.hbm [shape: f32[1,32], index: 2, kind: input, shape index: {}]   ;;  %s4143_s3 = inlined_call_operand.hbm [shape: f32[9,32,64], index: 3, kind: input, shape index: {}]   ;;  %s4144_s4 = inlined_call_operand.hbm [shape: f32[1,64], index: 4, kind: input, shape index: {}]   ;;  %s4145_s5 = inlined_call_operand.vmem [shape: f32[2,12,12,64], index: 5, kind: output, shape index: {}]  }
   0x1   :  { %11 = vsyncpa [#allocation6], 0 }
   0x2   :  { %12 = vsyncpa [#allocation9], 0  ;;  %s3459_s18 = smov 0   ;;  %s3461_s19 = smov 0  }
   0x3   :  { %s3463_s20 = smov 0   ;;  %s3465_s21 = smov 0  }
   0x4   :  { %s3467_s22 = smov 0  }
   0x5 LB: > { %s3421_s23 = smov [#allocation5]   ;;  %s2572_s25 = sadd.s32 4294967295, %s3419_s22   ;;  %s3419_s22 = sphi %s3467_s22, %s18_s22   ;;  %s3415_s21 = sphi %s3465_s21, %s4155_s21   ;;  %s3411_s20 = sphi %s3463_s20, %s4154_s20   ;;  %s3407_s19 = sphi %s3461_s19, %s4153_s19   ;;  %s3403_s18 = sphi %s3459_s18, %s4152_s18  }
   0x6   : > { %s199_s24 = sshll.u32 %s3421_s23, 4  ;;  %p2574_p0 = scmp.ge.s32.totalorder %s3419_s22, 1  ;;  %s200_s24 = int_to_ptr.vmem [resolvable:$true] %s199_s24 }
   0x7   : > { %p173_p1 = scmp.lt.s32.totalorder %s3419_s22, 25  ;;  %p3487_p2 = scmp.eq.s32.totalorder %s2572_s25, 0 }
   0x8   : > { %s27_s29 = sadd.s32 1, %s3411_s20  ;;  %s3276_s6 = scalar_lea.vmem %s200_s24, 16 }
   0x9   : > { %p3491_p3 = pnand %p2574_p0, %p173_p1  ;;  %p3504_p6 = scmp.ge.s32.totalorder %s27_s29, 12 }
   0xa   : > { %p3277_p8 = scmp.ne.s32.totalorder %s200_s24, %s3276_s6  ;;  %s3283_s7 = scalar_lea.vmem %s200_s24, 32 }
   0xb   : > { %p3196_p4 = pneg %p3491_p3  ;;  %p3284_p11 = scmp.lt.s32.totalorder %s200_s24, %s200_s24 }
   0xc   : > { %p3285_p12 = scmp.lt.s32.totalorder %s3283_s7, %s3276_s6 }
   0xd   : > { %p3499_p5 = pnand %p3487_p2, %p3196_p4 }
   0xe   : > { %p3286_p13 = por %p3285_p12, %p3284_p11 }
   0xf   : > { %p3267_p7 = pneg %p3499_p5 }
  0x11   : > { %p3279_p9 = pnand %p3277_p8, %p3267_p7 }
  0x13   : > { %p3280_p10 = pneg %p3279_p9 }
  0x15   : > { %p3287_p0 = pnand %p3286_p13, %p3280_p10 }
  0x17   : > { %3290 = shalt.err (!%p3287_p0)
}
  0x18   : > { %3202 = dma.hbm_to_vmem [thread:$0]  (!%p3499_p5), %s4142_s2, 16, %s200_s24, [#allocation6]  }
  0x19   : > { %s4157_s29 = smov (%p3504_p6, %s27_s29), 0  ;;  %s30_s10 = sadd.s32 1, %s3415_s21 }
  0x1a   : > { %s4159_s10 = smov (!%p3504_p6, %s30_s10), %s3415_s21  ;;  %s3422_s11 = smov [#allocation3]  }
  0x1b   : > { %s185_s12 = sshll.u32 %s3422_s11, 4  ;;  %p32_p1 = scmp.ge.s32.totalorder %s4159_s10, 2  ;;  %s186_s12 = int_to_ptr.vmem [resolvable:$true] %s185_s12 }
  0x1c   : > { %s3302_s13 = scalar_lea.vmem %s186_s12, 256  ;;  %p3310_p10 = scmp.lt.s32.totalorder %s186_s12, %s186_s12 }
  0x1d   : > { %s4161_s10 = smov (%p32_p1, %s4159_s10), 0  ;;  %p3303_p4 = scmp.ne.s32.totalorder %s186_s12, %s3302_s13 }
  0x1e   : > { %p3311_p11 = scmp.lt.s32.totalorder %s3302_s13, %s3302_s13 }
  0x1f   : > { %p3305_p8 = pnand %p3303_p4, %p3267_p7 }
  0x20   : > { %p3312_p12 = por %p3311_p11, %p3310_p10 }
  0x21   : > { %p3306_p9 = pneg %p3305_p8 }
  0x23   : > { %p3313_p13 = pnand %p3312_p12, %p3306_p9 }
  0x25   : > { %3316 = shalt.err (!%p3313_p13)
}
  0x26   : > { %s3423_s14 = smov 128   ;;  %s3424_s15 = smov 8  }
  0x27   : > { %3199 = dma.hbm_to_vmem [thread:$0]  (!%p3499_p5), %s4141_s1, 256, %s186_s12, [#allocation4], %s3423_s14, %s3423_s14, %s3424_s15  }
  0x28   : > { %s3425_s23 = smov [#allocation7]   ;;  %s3426_s25 = smov [#allocation8]  }
  0x29   : > { %s209_s24 = sshll.u32 %s3425_s23, 4  ;;  %s223_s30 = sshll.u32 %s3426_s25, 4  ;;  %s210_s24 = int_to_ptr.vmem [resolvable:$true] %s209_s24  ;;  %s224_s30 = int_to_ptr.vmem [resolvable:$true] %s223_s30 }
  0x2a   : > { %s3328_s6 = scalar_lea.vmem %s210_s24, 4608  ;;  %p3336_p4 = scmp.lt.s32.totalorder %s210_s24, %s210_s24 }
  0x2b   : > { %p3329_p6 = scmp.ne.s32.totalorder %s210_s24, %s3328_s6  ;;  %p3337_p8 = scmp.lt.s32.totalorder %s3328_s6, %s3328_s6 }
  0x2d   : > { %p3331_p0 = pnand %p3329_p6, %p3267_p7  ;;  %p3338_p9 = por %p3337_p8, %p3336_p4 }
  0x2f   : > { %p3332_p1 = pneg %p3331_p0 }
  0x31   : > { %p3339_p10 = pnand %p3338_p9, %p3332_p1 }
  0x33   : > { %3342 = shalt.err (!%p3339_p10)
}
  0x34   : > { %3205 = dma.hbm_to_vmem [thread:$0]  (!%p3499_p5), %s4143_s3, 4608, %s210_s24, [#allocation6], %s3423_s14, %s3423_s14, %s3424_s15  }
  0x35   : > { %s3354_s9 = scalar_lea.vmem %s224_s30, 16  ;;  %s3361_s11 = scalar_lea.vmem %s224_s30, 32 }
  0x36   : > { %p3355_p11 = scmp.ne.s32.totalorder %s224_s30, %s3354_s9  ;;  %p3362_p6 = scmp.lt.s32.totalorder %s224_s30, %s224_s30 }
  0x37   : > { %p3363_p0 = scmp.lt.s32.totalorder %s3361_s11, %s3354_s9 }
  0x38   : > { %p3357_p12 = pnand %p3355_p11, %p3267_p7 }
  0x39   : > { %p3364_p4 = por %p3363_p0, %p3362_p6 }
  0x3a   : > { %p3358_p13 = pneg %p3357_p12 }
  0x3c   : > { %p3365_p1 = pnand %p3364_p4, %p3358_p13 }
  0x3e   : > { %3368 = shalt.err (!%p3365_p1)
}
  0x3f   : > { %3208 = dma.hbm_to_vmem [thread:$0]  (!%p3499_p5), %s4144_s4, 16, %s224_s30, [#allocation9]  }
  0x40   : > { %244 = sbr.rel (%p3491_p3) target bundleno = 825 (0x339), region = 40 }
  0x45   : > { %3390 = dma.done.wait (%p3487_p2), [#allocation4], 256  }
  0x46   : > { %3392 = vsyncadd (%p3487_p2), [#allocation4], 4294967040 }
  0x47   : > { %3394 = dma.done.wait (%p3487_p2), [#allocation6], 4624  }
  0x48   : > { %3396 = vsyncadd (%p3487_p2), [#allocation6], 4294962672 }
  0x49   : > { %3398 = dma.done.wait (%p3487_p2), [#allocation9], 16  }
  0x4a   : > { %3400 = vsyncadd (%p3487_p2), [#allocation9], 4294967280  ;;  %p288_p3 = scmp.lt.s32.totalorder %s3407_s19, 1  ;;  %s2588_s28 = sshll.u32 %s3403_s18, 6  ;;  %vm378_vm0 = vcmask 1040384   ;;  %vm329_vm1 = vcmask 72704  }
  0x4b   : > { %v321_v0 = vld [vmem:[#allocation3 + $0x8] sm:$0x1]  ;;  %v320_v1 = vld [vmem:[#allocation3] sm:$0xff]  ;;  %v3427_v18 = vmov 0.0   ;;  %v3610_v19 = vld [vmem:[#allocation7 + $0x38] sm:$0xff]  ;;  %vm3428_vm2 = vmmov 0  }
  0x4c   : > { %s4163_s19 = smov (!%p288_p3, %s3407_s19), 1  ;;  %2826 = vmatprep.subr.msk.mxu0 %vm378_vm0, %v321_v0  ;;  %2854 = vmatprep.subr.mxu1 %v3427_v18  ;;  %v3615_v20 = vld [vmem:[#allocation7 + $0x30] sm:$0xff]  ;;  %v3619_v21 = vld [vmem:[#allocation7 + $0x28] sm:$0xff]  ;;  %v3623_v22 = vld [vmem:[#allocation7 + $0x20] sm:$0xff]  ;;  %vm543_vm3 = vcmask 261120   ;;  %vm2273_vm6 = vcmask 195584  }
  0x4d   : > { %s3178_s27 = smul.u32 832, %s4163_s19  ;;  %2827 = vmatpush3.msk.msra.mxu0 %vm378_vm0, %v321_v0  ;;  %2855 = vmatpush3.msra.mxu1 %v3610_v19  ;;  %v3628_v23 = vld [vmem:[#allocation7 + $0x78] sm:$0xff]  ;;  %v3635_v24 = vld [vmem:[#allocation7 + $0x70] sm:$0xff]  ;;  %v3639_v25 = vld [vmem:[#allocation7 + $0x68] sm:$0xff]  ;;  %p295_p2 = scmp.lt.s32.totalorder %s3403_s18, 11  ;;  %vm2440_vm9 = vcmask 519168  }
  0x4e   : > { %2828 = vmatprep.subr.mxu0 %v320_v1  ;;  %2856 = vmatprep.subr.mxu1 %v3427_v18  ;;  %v3642_v26 = vld [vmem:[#allocation7 + $0x60] sm:$0xff]  ;;  %v3647_v27 = vld [vmem:[#allocation5] ss:$0 sm:$0xff]  ;;  %v3666_v53 = vld [vmem:[#allocation7 + $0x10] sm:$0xff]  ;;  %s3179_s26 = smul.u32 24, %s4163_s19  ;;  %vm2438_vm10 = vcmask 523264  }
  0x4f   : > { %s292_s16 = scalar_lea.vmem %s4140_s0, %s3178_s27  ;;  %2829 = vmatpush3.msra.mxu0 %v320_v1  ;;  %2857 = vmatpush3.msra.mxu1 %v3615_v20  ;;  %v3661_v48 = vld [vmem:[#allocation7 + $0x18] sm:$0xff]  ;;  %v3673_v56 = vld [vmem:[#allocation7 + $0x8] sm:$0xff]  ;;  %v3680_v60 = vld [vmem:[#allocation7] sm:$0xff]  ;;  %s4165_s18 = smov (!%p295_p2, %s3403_s18), 11 }
  0x50   : > { %s3575_s17 = scalar_lea.vmem %s292_s16, %s2588_s28  ;;  %2905 = vmatprep.subr.mxu0 %v3427_v18  ;;  %2858 = vmatprep.subr.mxu1 %v3427_v18  ;;  %s2586_s23 = sshll.u32 %s4165_s18, 1 }
  0x51   : > { %v304_v2 = vld [vmem:[%s3575_s17] sm:$0xff]  ;;  %v305_v3 = vld [vmem:[%s3575_s17 + $0x8] sm:$0xff]  ;;  %v306_v4 = vld [vmem:[%s3575_s17 + $0x10] sm:$0xff]  ;;  %2859 = vmatpush3.msra.mxu1 %v3619_v21  ;;  %2862 = vmatprep.mubr.msk.f32.mxu1 %vm3428_vm2, %v3427_v18  ;;  %s299_s24 = sadd.s32 %s3179_s26, %s2586_s23 }
  0x52   : > { %2830 = vmatprep.mubr.msk.f32.mxu0 %vm329_vm1, %v304_v2  ;;  %v307_v5 = vld [vmem:[%s3575_s17 + $0x18] sm:$0xff]  ;;  %v308_v6 = vld [vmem:[%s3575_s17 + $0x20] sm:$0xff]  ;;  %v309_v7 = vld [vmem:[%s3575_s17 + $0x28] sm:$0xff]  ;;  %2860 = vmatprep.subr.mxu1 %v3427_v18  ;;  %s2587_s25 = sshll.u32 %s299_s24, 3 }
  0x53   : > { %2831 = vmatmul.mubr.msk.f32.vlgmr.msra.gmra.mxu0 %vm329_vm1, %v305_v3  ;;  %v310_v8 = vld [vmem:[%s3575_s17 + $0x30] sm:$0xff]  ;;  %v311_v9 = vld [vmem:[%s3575_s17 + $0x38] sm:$0xff]  ;;  %v312_v10 = vld [vmem:[%s3575_s17 + $0x40] sm:$0xff]  ;;  %2861 = vmatpush3.msra.mxu1 %v3623_v22  ;;  %s301_s7 = scalar_lea.vmem %s4145_s5, %s2587_s25 }
  0x54   : > { %2833 = vmatprep.mubr.msk.f32.mxu0 %vm329_vm1, %v306_v4  ;;  %v313_v11 = vld [vmem:[%s3575_s17 + $0x48] sm:$0xff]  ;;  %v314_v12 = vld [vmem:[%s3575_s17 + $0x50] sm:$0xff]  ;;  %v315_v13 = vld [vmem:[%s3575_s17 + $0x58] sm:$0xff]  ;;  %2871 = vmatprep.subr.mxu1 %v3427_v18 }
  0x55   : > { %v316_v14 = vld [vmem:[%s3575_s17 + $0x60] sm:$0xff]  ;;  %v317_v15 = vld [vmem:[%s3575_s17 + $0x68] sm:$0xff]  ;;  %v318_v16 = vld [vmem:[%s3575_s17 + $0x70] sm:$0xff]  ;;  %2906 = vmatpush3.msra.mxu0 %v3628_v23 }
  0x56   : > { %v319_v17 = vld [vmem:[%s3575_s17 + $0x78] sm:$0xff]  ;;  %2907 = vmatprep.subr.mxu0 %v3427_v18  ;;  %v3692_v4 = vld [vmem:[#allocation7 + $0xb8] sm:$0xff] }
  0x57   : > { %2834 = vmatmul.mubr.msk.f32.gmra.mxu0 %vm329_vm1, %v307_v5 }
  0x58   : > { %2836 = vmatprep.mubr.msk.f32.mxu0 %vm329_vm1, %v308_v6  ;;  %2908 = vmatpush3.msra.mxu0 %v3635_v24 }
  0x59   : > { %2909 = vmatprep.subr.mxu0 %v3427_v18 }
  0x5a   : > { %2910 = vmatpush3.msra.mxu0 %v3639_v25 }
  0x5b   : > { %2837 = vmatmul.mubr.msk.f32.gmra.mxu0 %vm329_vm1, %v309_v7  ;;  %2911 = vmatprep.subr.mxu0 %v3427_v18 }
  0x5c   : > { %2839 = vmatprep.mubr.msk.f32.mxu0 %vm329_vm1, %v310_v8  ;;  %2912 = vmatpush3.msra.mxu0 %v3642_v26 }
  0x5d   : > { %2939 = vmatprep.subr.mxu0 %v3427_v18 }
  0x5f   : > { %2840 = vmatmul.mubr.msk.f32.gmra.mxu0 %vm329_vm1, %v311_v9 }
  0x60   : > { %2842 = vmatprep.mubr.msk.f32.mxu0 %vm329_vm1, %v312_v10 }
  0x63   : > { %2843 = vmatmul.mubr.msk.f32.gmra.mxu0 %vm329_vm1, %v313_v11 }
  0x64   : > { %2845 = vmatprep.mubr.msk.f32.mxu0 %vm329_vm1, %v314_v12 }
  0x67   : > { %2846 = vmatmul.mubr.msk.f32.gmra.mxu0 %vm329_vm1, %v315_v13  ;;  %v3710_v13 = vld [vmem:[#allocation7 + $0xb0] sm:$0xff] }
  0x68   : > { %2848 = vmatprep.mubr.msk.f32.mxu0 %vm329_vm1, %v316_v14  ;;  %v3712_v14 = vld [vmem:[#allocation7 + $0x58] sm:$0xff] }
  0x6b   : > { %2849 = vmatmul.mubr.msk.f32.gmra.mxu0 %vm329_vm1, %v317_v15 }
  0x6c   : > { %2851 = vmatprep.mubr.msk.f32.mxu0 %vm329_vm1, %v318_v16 }
  0x6f   : > { %2852 = vmatmul.mubr.msk.f32.gmra.mxu0 %vm329_vm1, %v319_v17 }
  0x70   : > { %2913 = vmatprep.mubr.msk.f32.mxu0 %vm3428_vm2, %v3427_v18 }
 0x113   : > { %v2832_v28 = vpop.f32.mrf.mxu0 }
 0x114   : > { %v454_v29 = vadd.f32 %v2832_v28, %v3647_v27 }
 0x115   : > { %v448_v30 = vpop.f32.mrf.mxu0 }
 0x116   : > { %v528_v31 = vmax.f32 %v454_v29, 0.0  ;;  %v449_v32 = vadd.f32 %v3647_v27, %v448_v30  ;;  %v3727_v30 = vld [vmem:[#allocation7 + $0xa8] sm:$0xff] }
 0x117   : > { %v2835_v33 = vpop.f32.mrf.mxu0 }
 0x118   : > { %545 = vst.msk [vmem:[#allocation2 + $0x8] sm:$0xff] %vm543_vm3, %v528_v31  ;;  %v527_v34 = vmax.f32 %v449_v32, 0.0  ;;  %v464_v35 = vadd.f32 %v2835_v33, %v3647_v27 }
 0x119   : > { %v458_v36 = vpop.f32.mrf.mxu0 }
 0x11a   : > { %544 = vst.msk [vmem:[#allocation2] sm:$0xff] %vm543_vm3, %v527_v34  ;;  %v530_v37 = vmax.f32 %v464_v35, 0.0  ;;  %v459_v38 = vadd.f32 %v3647_v27, %v458_v36  ;;  %v3733_v34 = vld [vmem:[#allocation7 + $0x50] sm:$0xff]  ;;  %v3738_v36 = vld [vmem:[#allocation7 + $0xa0] sm:$0xff] }
 0x11b   : > { %v2838_v39 = vpop.f32.mrf.mxu0 }
 0x11c   : > { %547 = vst.msk [vmem:[#allocation2 + $0x18] sm:$0xff] %vm543_vm3, %v530_v37  ;;  %v529_v40 = vmax.f32 %v459_v38, 0.0  ;;  %v474_v41 = vadd.f32 %v2838_v39, %v3647_v27 }
 0x11d   : > { %v468_v42 = vpop.f32.mrf.mxu0 }
 0x11e   : > { %546 = vst.msk [vmem:[#allocation2 + $0x10] sm:$0xff] %vm543_vm3, %v529_v40  ;;  %v532_v43 = vmax.f32 %v474_v41, 0.0  ;;  %v469_v44 = vadd.f32 %v3647_v27, %v468_v42  ;;  %v3749_v40 = vld [vmem:[#allocation7 + $0x48] sm:$0xff]  ;;  %v3757_v42 = vld [vmem:[#allocation7 + $0x40] sm:$0xff] }
 0x11f   : > { %v2841_v45 = vpop.f32.mrf.mxu0  ;;  %v561_v33 = vld [vmem:[#allocation2 + $0x8] sm:$0xff] }
 0x120   : > { %549 = vst.msk [vmem:[#allocation2 + $0x28] sm:$0xff] %vm543_vm3, %v532_v43  ;;  %v531_v46 = vmax.f32 %v469_v44, 0.0  ;;  %v484_v47 = vadd.f32 %v2841_v45, %v3647_v27  ;;  %v3771_v45 = vld [vmem:[#allocation7 + $0xf8] sm:$0xff] }
 0x121   : > { %v567_v49 = vld [vmem:[#allocation2 + $0x1] sm:$0xff]  ;;  %v478_v50 = vpop.f32.mrf.mxu0 }
 0x122   : > { %548 = vst.msk [vmem:[#allocation2 + $0x20] sm:$0xff] %vm543_vm3, %v531_v46  ;;  %2863 = vmatmul.mubr.msk.f32.vlgmr.msra.gmra.mxu1 %vm543_vm3, %v567_v49  ;;  %v534_v51 = vmax.f32 %v484_v47, 0.0  ;;  %v479_v52 = vadd.f32 %v3647_v27, %v478_v50  ;;  %v560_v12 = vld [vmem:[#allocation2] sm:$0xff]  ;;  %v3788_v50 = vld [vmem:[#allocation7 + $0x98] sm:$0xff] }
 0x123   : > { %2865 = vmatprep.mubr.msk.f32.mxu1 %vm3428_vm2, %v3427_v18  ;;  %2872 = vmatpush3.msra.mxu1 %v3661_v48  ;;  %v2844_v54 = vpop.f32.mrf.mxu0  ;;  %v753_v44 = vld [vmem:[#allocation2 + $0x2] sm:$0xff] }
 0x124   : > { %551 = vst.msk [vmem:[#allocation2 + $0x38] sm:$0xff] %vm543_vm3, %v534_v51  ;;  %v533_v55 = vmax.f32 %v479_v52, 0.0  ;;  %2873 = vmatprep.subr.mxu1 %v3427_v18  ;;  %v494_v57 = vadd.f32 %v2844_v54, %v3647_v27  ;;  %v3779_v46 = vld [vmem:[#allocation7 + $0xf0] sm:$0xff]  ;;  %v3790_v51 = vld [vmem:[#allocation7 + $0xe8] sm:$0xff]  ;;  %v3801_v54 = vld [vmem:[#allocation7 + $0xe0] sm:$0xff] }
 0x125   : > { %v568_v58 = vld [vmem:[#allocation2 + $0x9] sm:$0xff]  ;;  %2874 = vmatpush3.msra.mxu1 %v3666_v53  ;;  %v488_v59 = vpop.f32.mrf.mxu0  ;;  %v569_v2 = vld [vmem:[#allocation2 + $0x11] sm:$0xff] }
 0x126   : > { %550 = vst.msk [vmem:[#allocation2 + $0x30] sm:$0xff] %vm543_vm3, %v533_v55  ;;  %2866 = vmatmul.mubr.msk.f32.gmra.mxu1 %vm543_vm3, %v568_v58  ;;  %2875 = vmatprep.subr.mxu1 %v3427_v18  ;;  %v536_v61 = vmax.f32 %v494_v57, 0.0  ;;  %v489_v62 = vadd.f32 %v3647_v27, %v488_v59  ;;  %v754_v49 = vld [vmem:[#allocation2 + $0xa] sm:$0xff]  ;;  %v3797_v52 = vld [vmem:[#allocation7 + $0x90] sm:$0xff]  ;;  %v3810_v57 = vld [vmem:[#allocation7 + $0x88] sm:$0xff] }
 0x127   : > { %2868 = vmatprep.mubr.msk.f32.mxu1 %vm3428_vm2, %v3427_v18  ;;  %2876 = vmatpush3.msra.mxu1 %v3673_v56  ;;  %v2847_v63 = vpop.f32.mrf.mxu0  ;;  %v3703_v8 = vld [vmem:[#allocation2 + $0x28] sm:$0xff]  ;;  %v755_v58 = vld [vmem:[#allocation2 + $0x12] sm:$0xff] }
 0x128   : > { %2877 = vmatprep.subr.mxu1 %v3427_v18  ;;  %553 = vst.msk [vmem:[#allocation2 + $0x48] sm:$0xff] %vm543_vm3, %v536_v61  ;;  %v535_v0 = vmax.f32 %v489_v62, 0.0  ;;  %v504_v1 = vadd.f32 %v2847_v63, %v3647_v27  ;;  %v3817_v59 = vld [vmem:[#allocation7 + $0x80] sm:$0xff] }
 0x129   : > { %v3689_v3 = vld [vmem:[#allocation2 + $0x20] sm:$0xff]  ;;  %2878 = vmatpush3.msra.mxu1 %v3680_v60  ;;  %v498_v5 = vpop.f32.mrf.mxu0 }
 0x12a   : > { %2869 = vmatmul.mubr.msk.f32.gmra.mxu1 %vm543_vm3, %v569_v2  ;;  %2914 = vmatmul.mubr.msk.f32.vlgmr.msra.gmra.mxu0 %vm543_vm3, %v3689_v3  ;;  %552 = vst.msk [vmem:[#allocation2 + $0x40] sm:$0xff] %vm543_vm3, %v535_v0  ;;  %v538_v6 = vmax.f32 %v504_v1, 0.0  ;;  %v499_v7 = vadd.f32 %v3647_v27, %v498_v5  ;;  %v3747_v39 = vld [vmem:[#allocation2 + $0x22] sm:$0xff]  ;;  %v3843_v1 = vld [vmem:[#allocation7 + $0xd8] sm:$0xff] }
 0x12b   : > { %2879 = vmatprep.mubr.msk.f32.mxu1 %vm3428_vm2, %v3427_v18  ;;  %2916 = vmatprep.mubr.msk.f32.mxu0 %vm3428_vm2, %v3427_v18  ;;  %v2850_v9 = vpop.f32.mrf.mxu0  ;;  %v953_v62 = vld [vmem:[#allocation2 + $0x21] sm:$0xff] }
 0x12c   : > { %2940 = vmatpush3.msra.mxu0 %v3692_v4  ;;  %2888 = vmatprep.subr.mxu1 %v3427_v18  ;;  %555 = vst.msk [vmem:[#allocation2 + $0x58] sm:$0xff] %vm543_vm3, %v538_v6  ;;  %v537_v10 = vmax.f32 %v499_v7, 0.0  ;;  %v514_v11 = vadd.f32 %v2850_v9, %v3647_v27  ;;  %v3891_v6 = vld [vmem:[#allocation7 + $0x118] sm:$0xff]  ;;  %v3898_v7 = vld [vmem:[#allocation7 + $0x110] sm:$0xff]  ;;  %v3907_v9 = vld [vmem:[#allocation7 + $0x108] sm:$0xff] }
 0x12d   : > { %2941 = vmatprep.subr.mxu0 %v3427_v18  ;;  %v508_v15 = vpop.f32.mrf.mxu0  ;;  %v3723_v28 = vld [vmem:[#allocation2 + $0x30] sm:$0xff] }
 0x12e   : > { %2880 = vmatmul.mubr.msk.f32.vlgmr.msra.gmra.mxu1 %vm543_vm3, %v560_v12  ;;  %2917 = vmatmul.mubr.msk.f32.gmra.mxu0 %vm543_vm3, %v3703_v8  ;;  %554 = vst.msk [vmem:[#allocation2 + $0x50] sm:$0xff] %vm543_vm3, %v537_v10  ;;  %v540_v16 = vmax.f32 %v514_v11, 0.0  ;;  %v509_v17 = vadd.f32 %v3647_v27, %v508_v15  ;;  %v3766_v43 = vld [vmem:[#allocation2 + $0x2a] sm:$0xff]  ;;  %v3784_v47 = vld [vmem:[#allocation2 + $0x32] sm:$0xff] }
 0x12f   : > { %2882 = vmatprep.mubr.msk.f32.mxu1 %vm3428_vm2, %v3427_v18  ;;  %2919 = vmatprep.mubr.msk.f32.mxu0 %vm3428_vm2, %v3427_v18  ;;  %v2853_v29 = vpop.f32.mrf.mxu0  ;;  %v954_v0 = vld [vmem:[#allocation2 + $0x29] sm:$0xff]  ;;  %v955_v2 = vld [vmem:[#allocation2 + $0x31] sm:$0xff] }
 0x130   : > { %2942 = vmatpush3.msra.mxu0 %v3710_v13  ;;  %2889 = vmatpush3.msra.mxu1 %v3712_v14  ;;  %557 = vst.msk [vmem:[#allocation2 + $0x68] sm:$0xff] %vm543_vm3, %v540_v16  ;;  %v539_v31 = vmax.f32 %v509_v17, 0.0  ;;  %v524_v32 = vadd.f32 %v2853_v29, %v3647_v27  ;;  %v3888_v5 = vld [vmem:[#allocation2 + $0x48] sm:$0xff]  ;;  %v3917_v11 = vld [vmem:[#allocation7 + $0x100] sm:$0xff]  ;;  %v2252_v17 = vlaneseq }
 0x131   : > { %2943 = vmatprep.subr.mxu0 %v3427_v18  ;;  %2890 = vmatprep.subr.mxu1 %v3427_v18  ;;  %v518_v35 = vpop.f32.mrf.mxu0  ;;  %v3808_v55 = vld [vmem:[#allocation2 + $0x41] sm:$0xff] }
 0x132   : > { %2883 = vmatmul.mubr.msk.f32.gmra.mxu1 %vm543_vm3, %v561_v33  ;;  %2920 = vmatmul.mubr.msk.f32.gmra.mxu0 %vm543_vm3, %v3723_v28  ;;  %556 = vst.msk [vmem:[#allocation2 + $0x60] sm:$0xff] %vm543_vm3, %v539_v31  ;;  %v542_v37 = vmax.f32 %v524_v32, 0.0  ;;  %v519_v38 = vadd.f32 %v3647_v27, %v518_v35  ;;  %v562_v27 = vld [vmem:[#allocation2 + $0x10] sm:$0xff]  ;;  %v3928_v12 = vld [vmem:[#allocation2 + $0x42] sm:$0xff] }
 0x133   : > { %2944 = vmatpush3.msra.mxu0 %v3727_v30  ;;  %2885 = vmatprep.mubr.msk.f32.mxu1 %vm3428_vm2, %v3427_v18 }
 0x134   : > { %2945 = vmatprep.subr.mxu0 %v3427_v18  ;;  %2891 = vmatpush3.msra.mxu1 %v3733_v34  ;;  %559 = vst.msk [vmem:[#allocation2 + $0x78] sm:$0xff] %vm543_vm3, %v542_v37  ;;  %v541_v41 = vmax.f32 %v519_v38, 0.0 }
 0x135   : > { %2946 = vmatpush3.msra.mxu0 %v3738_v36  ;;  %2947 = vmatprep.mubr.msk.f32.mxu0 %vm3428_vm2, %v3427_v18  ;;  %v3825_v61 = vld [vmem:[#allocation2 + $0x49] sm:$0xff]  ;;  %v3839_v63 = vld [vmem:[#allocation2 + $0x51] sm:$0xff] }
 0x136   : > { %2886 = vmatmul.mubr.msk.f32.gmra.mxu1 %vm543_vm3, %v562_v27  ;;  %2892 = vmatprep.subr.mxu1 %v3427_v18  ;;  %558 = vst.msk [vmem:[#allocation2 + $0x70] sm:$0xff] %vm543_vm3, %v541_v41  ;;  %v3912_v10 = vld [vmem:[#allocation2 + $0x50] sm:$0xff] }
 0x137   : > { %2948 = vmatmul.mubr.msk.f32.vlgmr.msra.gmra.mxu0 %vm543_vm3, %v3747_v39  ;;  %2893 = vmatpush3.msra.mxu1 %v3749_v40  ;;  %v3960_v15 = vld [vmem:[#allocation2 + $0x52] sm:$0xff] }
 0x138   : > { %2894 = vmatprep.subr.mxu1 %v3427_v18  ;;  %2896 = vmatprep.mubr.msk.f32.mxu1 %vm3428_vm2, %v3427_v18 }
 0x139   : > { %2895 = vmatpush3.msra.mxu1 %v3757_v42  ;;  %2950 = vmatprep.mubr.msk.f32.mxu0 %vm3428_vm2, %v3427_v18 }
 0x13a   : > { %2897 = vmatmul.mubr.msk.f32.vlgmr.msra.gmra.mxu1 %vm543_vm3, %v753_v44  ;;  %2973 = vmatprep.subr.mxu0 %v3427_v18 }
 0x13b   : > { %2951 = vmatmul.mubr.msk.f32.gmra.mxu0 %vm543_vm3, %v3766_v43  ;;  %2899 = vmatprep.mubr.msk.f32.mxu1 %vm3428_vm2, %v3427_v18 }
 0x13c   : > { %2974 = vmatpush3.msra.mxu0 %v3771_v45  ;;  %2953 = vmatprep.mubr.msk.f32.mxu0 %vm3428_vm2, %v3427_v18 }
 0x13d   : > { %2975 = vmatprep.subr.mxu0 %v3427_v18  ;;  %2922 = vmatprep.subr.mxu1 %v3427_v18 }
 0x13e   : > { %2976 = vmatpush3.msra.mxu0 %v3779_v46  ;;  %2900 = vmatmul.mubr.msk.f32.gmra.mxu1 %vm543_vm3, %v754_v49 }
 0x13f   : > { %2954 = vmatmul.mubr.msk.f32.gmra.mxu0 %vm543_vm3, %v3784_v47  ;;  %2977 = vmatprep.subr.mxu0 %v3427_v18 }
 0x140   : > { %2923 = vmatpush3.msra.mxu1 %v3788_v50  ;;  %2978 = vmatpush3.msra.mxu0 %v3790_v51 }
 0x141   : > { %2924 = vmatprep.subr.mxu1 %v3427_v18  ;;  %2979 = vmatprep.subr.mxu0 %v3427_v18 }
 0x142   : > { %2902 = vmatprep.mubr.msk.f32.mxu1 %vm3428_vm2, %v3427_v18  ;;  %2925 = vmatpush3.msra.mxu1 %v3797_v52 }
 0x143   : > { %2980 = vmatpush3.msra.mxu0 %v3801_v54  ;;  %2981 = vmatprep.mubr.msk.f32.mxu0 %vm3428_vm2, %v3427_v18 }
 0x144   : > { %2903 = vmatmul.mubr.msk.f32.gmra.mxu1 %vm543_vm3, %v755_v58  ;;  %2926 = vmatprep.subr.mxu1 %v3427_v18 }
 0x145   : > { %2982 = vmatmul.mubr.msk.f32.vlgmr.msra.gmra.mxu0 %vm543_vm3, %v3808_v55  ;;  %2927 = vmatpush3.msra.mxu1 %v3810_v57 }
 0x146   : > { %2928 = vmatprep.subr.mxu1 %v3427_v18  ;;  %2930 = vmatprep.mubr.msk.f32.mxu1 %vm3428_vm2, %v3427_v18 }
 0x147   : > { %2929 = vmatpush3.msra.mxu1 %v3817_v59  ;;  %2984 = vmatprep.mubr.msk.f32.mxu0 %vm3428_vm2, %v3427_v18 }
 0x148   : > { %2931 = vmatmul.mubr.msk.f32.vlgmr.msra.gmra.mxu1 %vm543_vm3, %v953_v62  ;;  %3007 = vmatprep.subr.mxu0 %v3427_v18 }
 0x149   : > { %2985 = vmatmul.mubr.msk.f32.gmra.mxu0 %vm543_vm3, %v3825_v61  ;;  %2933 = vmatprep.mubr.msk.f32.mxu1 %vm3428_vm2, %v3427_v18 }
 0x14a   : > { %3008 = vmatpush3.msra.mxu0 %v3610_v19  ;;  %2987 = vmatprep.mubr.msk.f32.mxu0 %vm3428_vm2, %v3427_v18  ;;  %v3850_v19 = vld [vmem:[#allocation7 + $0xd0] sm:$0xff] }
 0x14b   : > { %3009 = vmatprep.subr.mxu0 %v3427_v18  ;;  %2956 = vmatprep.subr.mxu1 %v3427_v18 }
 0x14c   : > { %3010 = vmatpush3.msra.mxu0 %v3615_v20  ;;  %2934 = vmatmul.mubr.msk.f32.gmra.mxu1 %vm543_vm3, %v954_v0  ;;  %v3859_v20 = vld [vmem:[#allocation7 + $0xc8] sm:$0xff] }
 0x14d   : > { %2988 = vmatmul.mubr.msk.f32.gmra.mxu0 %vm543_vm3, %v3839_v63  ;;  %3011 = vmatprep.subr.mxu0 %v3427_v18 }
 0x14e   : > { %2957 = vmatpush3.msra.mxu1 %v3843_v1  ;;  %3012 = vmatpush3.msra.mxu0 %v3619_v21  ;;  %v3866_v21 = vld [vmem:[#allocation7 + $0xc0] sm:$0xff] }
 0x14f   : > { %2958 = vmatprep.subr.mxu1 %v3427_v18  ;;  %3013 = vmatprep.subr.mxu0 %v3427_v18 }
 0x150   : > { %2936 = vmatprep.mubr.msk.f32.mxu1 %vm3428_vm2, %v3427_v18  ;;  %2959 = vmatpush3.msra.mxu1 %v3850_v19 }
 0x151   : > { %3014 = vmatpush3.msra.mxu0 %v3623_v22  ;;  %3015 = vmatprep.mubr.msk.f32.mxu0 %vm3428_vm2, %v3427_v18  ;;  %v3876_v22 = vld [vmem:[#allocation2 + $0x40] sm:$0xff] }
 0x152   : > { %2937 = vmatmul.mubr.msk.f32.gmra.mxu1 %vm543_vm3, %v955_v2  ;;  %2960 = vmatprep.subr.mxu1 %v3427_v18 }
 0x153   : > { %3016 = vmatmul.mubr.msk.f32.vlgmr.msra.gmra.mxu0 %vm543_vm3, %v953_v62  ;;  %2961 = vmatpush3.msra.mxu1 %v3859_v20 }
 0x154   : > { %2962 = vmatprep.subr.mxu1 %v3427_v18  ;;  %2964 = vmatprep.mubr.msk.f32.mxu1 %vm3428_vm2, %v3427_v18 }
 0x155   : > { %2963 = vmatpush3.msra.mxu1 %v3866_v21  ;;  %3018 = vmatprep.mubr.msk.f32.mxu0 %vm3428_vm2, %v3427_v18 }
 0x156   : > { %2965 = vmatmul.mubr.msk.f32.vlgmr.msra.gmra.mxu1 %vm543_vm3, %v3876_v22  ;;  %3041 = vmatprep.subr.mxu0 %v3427_v18 }
 0x157   : > { %3019 = vmatmul.mubr.msk.f32.gmra.mxu0 %vm543_vm3, %v954_v0  ;;  %2967 = vmatprep.mubr.msk.f32.mxu1 %vm3428_vm2, %v3427_v18 }
 0x158   : > { %3042 = vmatpush3.msra.mxu0 %v3712_v14  ;;  %3021 = vmatprep.mubr.msk.f32.mxu0 %vm3428_vm2, %v3427_v18  ;;  %v3941_v14 = vld [vmem:[#allocation2 + $0x4a] sm:$0xff] }
 0x159   : > { %3043 = vmatprep.subr.mxu0 %v3427_v18  ;;  %2990 = vmatprep.subr.mxu1 %v3427_v18 }
 0x15a   : > { %3044 = vmatpush3.msra.mxu0 %v3733_v34  ;;  %2968 = vmatmul.mubr.msk.f32.gmra.mxu1 %vm543_vm3, %v3888_v5 }
 0x15b   : > { %3022 = vmatmul.mubr.msk.f32.gmra.mxu0 %vm543_vm3, %v955_v2  ;;  %3045 = vmatprep.subr.mxu0 %v3427_v18 }
 0x15c   : > { %2991 = vmatpush3.msra.mxu1 %v3891_v6  ;;  %3046 = vmatpush3.msra.mxu0 %v3749_v40 }
 0x15d   : > { %2992 = vmatprep.subr.mxu1 %v3427_v18  ;;  %3047 = vmatprep.subr.mxu0 %v3427_v18 }
 0x15e   : > { %2970 = vmatprep.mubr.msk.f32.mxu1 %vm3428_vm2, %v3427_v18  ;;  %2993 = vmatpush3.msra.mxu1 %v3898_v7 }
 0x15f   : > { %3048 = vmatpush3.msra.mxu0 %v3757_v42  ;;  %3049 = vmatprep.mubr.msk.f32.mxu0 %vm3428_vm2, %v3427_v18 }
 0x160   : > { %2971 = vmatmul.mubr.msk.f32.gmra.mxu1 %vm543_vm3, %v3912_v10  ;;  %2994 = vmatprep.subr.mxu1 %v3427_v18 }
 0x161   : > { %3050 = vmatmul.mubr.msk.f32.vlgmr.msra.gmra.mxu0 %vm543_vm3, %v3747_v39  ;;  %2995 = vmatpush3.msra.mxu1 %v3907_v9  ;;  %v4081_v39 = vand.u32 127, %v2252_v17 }
 0x162   : > { %2996 = vmatprep.subr.mxu1 %v3427_v18  ;;  %2998 = vmatprep.mubr.msk.f32.mxu1 %vm3428_vm2, %v3427_v18 }
 0x163   : > { %2997 = vmatpush3.msra.mxu1 %v3917_v11  ;;  %3052 = vmatprep.mubr.msk.f32.mxu0 %vm3428_vm2, %v3427_v18 }
 0x164   : > { %2999 = vmatmul.mubr.msk.f32.vlgmr.msra.gmra.mxu1 %vm543_vm3, %v3928_v12  ;;  %3075 = vmatprep.subr.mxu0 %v3427_v18 }
 0x165   : > { %3053 = vmatmul.mubr.msk.f32.gmra.mxu0 %vm543_vm3, %v3766_v43  ;;  %3001 = vmatprep.mubr.msk.f32.mxu1 %vm3428_vm2, %v3427_v18 }
 0x166   : > { %3076 = vmatpush3.msra.mxu0 %v3788_v50  ;;  %3055 = vmatprep.mubr.msk.f32.mxu0 %vm3428_vm2, %v3427_v18 }
 0x167   : > { %3077 = vmatprep.subr.mxu0 %v3427_v18  ;;  %3024 = vmatprep.subr.mxu1 %v3427_v18 }
 0x168   : > { %3078 = vmatpush3.msra.mxu0 %v3797_v52  ;;  %3002 = vmatmul.mubr.msk.f32.gmra.mxu1 %vm543_vm3, %v3941_v14 }
 0x169   : > { %3056 = vmatmul.mubr.msk.f32.gmra.mxu0 %vm543_vm3, %v3784_v47  ;;  %3079 = vmatprep.subr.mxu0 %v3427_v18 }
 0x16a   : > { %3025 = vmatpush3.msra.mxu1 %v3661_v48  ;;  %3080 = vmatpush3.msra.mxu0 %v3810_v57  ;;  %v1958_v48 = vld [vmem:[#allocation2 + $0x60] sm:$0xff] }
 0x16b   : > { %3026 = vmatprep.subr.mxu1 %v3427_v18  ;;  %3081 = vmatprep.subr.mxu0 %v3427_v18 }
 0x16c   : > { %3004 = vmatprep.mubr.msk.f32.mxu1 %vm3428_vm2, %v3427_v18  ;;  %3027 = vmatpush3.msra.mxu1 %v3666_v53  ;;  %v2150_v53 = vld [vmem:[#allocation2 + $0x72] sm:$0xff] }
 0x16d   : > { %3082 = vmatpush3.msra.mxu0 %v3817_v59  ;;  %3083 = vmatprep.mubr.msk.f32.mxu0 %vm3428_vm2, %v3427_v18 }
 0x16e   : > { %3005 = vmatmul.mubr.msk.f32.gmra.mxu1 %vm543_vm3, %v3960_v15  ;;  %3028 = vmatprep.subr.mxu1 %v3427_v18 }
 0x16f   : > { %3084 = vmatmul.mubr.msk.f32.vlgmr.msra.gmra.mxu0 %vm543_vm3, %v3808_v55  ;;  %3029 = vmatpush3.msra.mxu1 %v3673_v56  ;;  %v2053_v56 = vld [vmem:[#allocation2 + $0x61] sm:$0xff] }
 0x170   : > { %3030 = vmatprep.subr.mxu1 %v3427_v18  ;;  %3032 = vmatprep.mubr.msk.f32.mxu1 %vm3428_vm2, %v3427_v18 }
 0x171   : > { %3031 = vmatpush3.msra.mxu1 %v3680_v60  ;;  %3086 = vmatprep.mubr.msk.f32.mxu0 %vm3428_vm2, %v3427_v18  ;;  %v2054_v60 = vld [vmem:[#allocation2 + $0x69] sm:$0xff] }
 0x172   : > { %3033 = vmatmul.mubr.msk.f32.vlgmr.msra.gmra.mxu1 %vm543_vm3, %v3689_v3  ;;  %3109 = vmatprep.subr.mxu0 %v3427_v18  ;;  %v2055_v3 = vld [vmem:[#allocation2 + $0x71] sm:$0xff] }
 0x173   : > { %3087 = vmatmul.mubr.msk.f32.gmra.mxu0 %vm543_vm3, %v3825_v61  ;;  %3035 = vmatprep.mubr.msk.f32.mxu1 %vm3428_vm2, %v3427_v18 }
 0x174   : > { %3110 = vmatpush3.msra.mxu0 %v3843_v1  ;;  %3089 = vmatprep.mubr.msk.f32.mxu0 %vm3428_vm2, %v3427_v18 }
 0x175   : > { %3111 = vmatprep.subr.mxu0 %v3427_v18  ;;  %3058 = vmatprep.subr.mxu1 %v3427_v18 }
 0x176   : > { %3112 = vmatpush3.msra.mxu0 %v3850_v19  ;;  %3036 = vmatmul.mubr.msk.f32.gmra.mxu1 %vm543_vm3, %v3703_v8 }
 0x177   : > { %3090 = vmatmul.mubr.msk.f32.gmra.mxu0 %vm543_vm3, %v3839_v63  ;;  %3113 = vmatprep.subr.mxu0 %v3427_v18 }
 0x178   : > { %3059 = vmatpush3.msra.mxu1 %v3628_v23  ;;  %3114 = vmatpush3.msra.mxu0 %v3859_v20  ;;  %v1959_v23 = vld [vmem:[#allocation2 + $0x68] sm:$0xff] }
 0x179   : > { %3060 = vmatprep.subr.mxu1 %v3427_v18  ;;  %3115 = vmatprep.subr.mxu0 %v3427_v18 }
 0x17a   : > { %3038 = vmatprep.mubr.msk.f32.mxu1 %vm3428_vm2, %v3427_v18  ;;  %3061 = vmatpush3.msra.mxu1 %v3635_v24  ;;  %v1960_v24 = vld [vmem:[#allocation2 + $0x70] sm:$0xff] }
 0x17b   : > { %3116 = vmatpush3.msra.mxu0 %v3866_v21  ;;  %3117 = vmatprep.mubr.msk.f32.mxu0 %vm3428_vm2, %v3427_v18 }
 0x17c   : > { %3039 = vmatmul.mubr.msk.f32.gmra.mxu1 %vm543_vm3, %v3723_v28  ;;  %3062 = vmatprep.subr.mxu1 %v3427_v18 }
 0x17d   : > { %3118 = vmatmul.mubr.msk.f32.vlgmr.msra.gmra.mxu0 %vm543_vm3, %v1958_v48  ;;  %3063 = vmatpush3.msra.mxu1 %v3639_v25  ;;  %v2148_v25 = vld [vmem:[#allocation2 + $0x62] sm:$0xff] }
 0x17e   : > { %3064 = vmatprep.subr.mxu1 %v3427_v18  ;;  %3066 = vmatprep.mubr.msk.f32.mxu1 %vm3428_vm2, %v3427_v18 }
 0x17f   : > { %3065 = vmatpush3.msra.mxu1 %v3642_v26  ;;  %3120 = vmatprep.mubr.msk.f32.mxu0 %vm3428_vm2, %v3427_v18  ;;  %v2149_v26 = vld [vmem:[#allocation2 + $0x6a] sm:$0xff] }
 0x180   : > { %3067 = vmatmul.mubr.msk.f32.vlgmr.msra.gmra.mxu1 %vm543_vm3, %v3876_v22  ;;  %3143 = vmatprep.subr.mxu0 %v3427_v18 }
 0x181   : > { %3121 = vmatmul.mubr.msk.f32.gmra.mxu0 %vm543_vm3, %v1959_v23  ;;  %3069 = vmatprep.mubr.msk.f32.mxu1 %vm3428_vm2, %v3427_v18 }
 0x182   : > { %3144 = vmatpush3.msra.mxu0 %v3891_v6  ;;  %3123 = vmatprep.mubr.msk.f32.mxu0 %vm3428_vm2, %v3427_v18 }
 0x183   : > { %3145 = vmatprep.subr.mxu0 %v3427_v18  ;;  %3092 = vmatprep.subr.mxu1 %v3427_v18 }
 0x184   : > { %3146 = vmatpush3.msra.mxu0 %v3898_v7  ;;  %3070 = vmatmul.mubr.msk.f32.gmra.mxu1 %vm543_vm3, %v3888_v5 }
 0x185   : > { %3124 = vmatmul.mubr.msk.f32.gmra.mxu0 %vm543_vm3, %v1960_v24  ;;  %3147 = vmatprep.subr.mxu0 %v3427_v18 }
 0x186   : > { %3093 = vmatpush3.msra.mxu1 %v3692_v4  ;;  %3148 = vmatpush3.msra.mxu0 %v3907_v9 }
 0x187   : > { %3094 = vmatprep.subr.mxu1 %v3427_v18  ;;  %3149 = vmatprep.subr.mxu0 %v3427_v18 }
 0x188   : > { %3072 = vmatprep.mubr.msk.f32.mxu1 %vm3428_vm2, %v3427_v18  ;;  %3095 = vmatpush3.msra.mxu1 %v3710_v13 }
 0x189   : > { %3150 = vmatpush3.msra.mxu0 %v3917_v11  ;;  %3151 = vmatprep.mubr.msk.f32.mxu0 %vm3428_vm2, %v3427_v18 }
 0x18a   : > { %3073 = vmatmul.mubr.msk.f32.gmra.mxu1 %vm543_vm3, %v3912_v10  ;;  %3096 = vmatprep.subr.mxu1 %v3427_v18 }
 0x18b   : > { %3152 = vmatmul.mubr.msk.f32.vlgmr.msra.gmra.mxu0 %vm543_vm3, %v2148_v25  ;;  %3097 = vmatpush3.msra.mxu1 %v3727_v30  ;;  %v2253_v30 = vshrl.u32 %v2252_v17, 7 }
 0x18c   : > { %3098 = vmatprep.subr.mxu1 %v3427_v18  ;;  %3100 = vmatprep.mubr.msk.f32.mxu1 %vm3428_vm2, %v3427_v18 }
 0x18d   : > { %3099 = vmatpush3.msra.mxu1 %v3738_v36  ;;  %3154 = vmatprep.mubr.msk.f32.mxu0 %vm3428_vm2, %v3427_v18  ;;  %v2254_v33 = vadd.s32 8, %v2253_v30  ;;  %v2257_v34 = vmul.u32 2, %v2253_v30 }
 0x18e   : > { %3101 = vmatmul.mubr.msk.f32.vlgmr.msra.gmra.mxu1 %vm543_vm3, %v3928_v12  ;;  %3126 = vmatprep.subr.mxu1 %v3427_v18 }
 0x18f   : > { %3155 = vmatmul.mubr.msk.f32.gmra.mxu0 %vm543_vm3, %v2149_v26  ;;  %3103 = vmatprep.mubr.msk.f32.mxu1 %vm3428_vm2, %v3427_v18  ;;  %v2258_v37 = vmul.u32 2, %v2254_v33  ;;  %v2265_v40 = vadd.s32 1, %v2257_v34  ;;  %vm2259_vm4 = vcmp.eq.s32.totalorder %v4081_v39, %v2257_v34 }
 0x190   : > { %3127 = vmatpush3.msra.mxu1 %v3771_v45  ;;  %3157 = vmatprep.mubr.msk.f32.mxu0 %vm3428_vm2, %v3427_v18  ;;  %v2662_v45 = vsel %vm2259_vm4, 1.0, %v3427_v18 }
 0x191   : > { %3128 = vmatprep.subr.mxu1 %v3427_v18  ;;  %v4083_v42 = vadd.s32 1, %v2258_v37  ;;  %vm2267_vm5 = vcmp.eq.s32.totalorder %v4081_v39, %v2265_v40  ;;  %vm4090_vm7 = vcmp.eq.s32.totalorder %v4081_v39, %v2258_v37 }
 0x192   : > { %3104 = vmatmul.mubr.msk.f32.gmra.mxu1 %vm543_vm3, %v3941_v14 }
 0x193   : > { %3158 = vmatmul.mubr.msk.f32.gmra.mxu0 %vm543_vm3, %v2150_v53  ;;  %3106 = vmatprep.mubr.msk.f32.mxu1 %vm3428_vm2, %v3427_v18  ;;  %vm2268_vm8 = vcmp.eq.s32.totalorder %v4081_v39, %v4083_v42 }
 0x194   : > { %3129 = vmatpush3.msra.mxu1 %v3779_v46  ;;  %v2664_v46 = vsel %vm2267_vm5, 1.0, %v3427_v18 }
 0x195   : > { %3130 = vmatprep.subr.mxu1 %v3427_v18  ;;  %3175 = vmatprep.mubr.msk.f32.mxu0 %vm2273_vm6, %v2664_v46 }
 0x196   : > { %3107 = vmatmul.mubr.msk.f32.gmra.mxu1 %vm543_vm3, %v3960_v15 }
 0x197   : > { %3131 = vmatpush3.msra.mxu1 %v3790_v51  ;;  %3134 = vmatprep.mubr.msk.f32.mxu1 %vm3428_vm2, %v3427_v18 }
 0x198   : > { %3132 = vmatprep.subr.mxu1 %v3427_v18 }
 0x199   : > { %3133 = vmatpush3.msra.mxu1 %v3801_v54 }
 0x19a   : > { %3135 = vmatmul.mubr.msk.f32.vlgmr.msra.gmra.mxu1 %vm543_vm3, %v2053_v56 }
 0x19b   : > { %3137 = vmatprep.mubr.msk.f32.mxu1 %vm3428_vm2, %v3427_v18 }
 0x19e   : > { %3138 = vmatmul.mubr.msk.f32.gmra.mxu1 %vm543_vm3, %v2054_v60 }
 0x19f   : > { %3140 = vmatprep.mubr.msk.f32.mxu1 %vm3428_vm2, %v3427_v18 }
 0x1a2   : > { %3141 = vmatmul.mubr.msk.f32.gmra.mxu1 %vm543_vm3, %v2055_v3 }
 0x1a3   : > { %3166 = vmatprep.mubr.msk.f32.mxu1 %vm2273_vm6, %v2662_v45 }
 0x1e2   : > { %v650_v4 = vpop.f32.mrf.mxu1 }
 0x1e4   : > { %v2864_v8 = vpop.f32.mrf.mxu1 }
 0x1e6   : > { %v655_v13 = vpop.f32.mrf.mxu1 }
 0x1e8   : > { %v2867_v16 = vpop.f32.mrf.mxu1 }
 0x1ea   : > { %v660_v28 = vpop.f32.mrf.mxu1  ;;  %v936_v29 = vpop.f32.mrf.mxu0 }
 0x1ec   : > { %v2870_v31 = vpop.f32.mrf.mxu1  ;;  %v2915_v32 = vpop.f32.mrf.mxu0 }
 0x1ee   : > { %v739_v35 = vpop.f32.mrf.mxu1  ;;  %v941_v36 = vpop.f32.mrf.mxu0 }
 0x1ef   : > { %v740_v38 = vadd.f32 %v739_v35, %v650_v4 }
 0x1f0   : > { %v2881_v41 = vpop.f32.mrf.mxu1  ;;  %v2918_v27 = vpop.f32.mrf.mxu0 }
 0x1f2   : > { %v744_v43 = vpop.f32.mrf.mxu1  ;;  %v946_v44 = vpop.f32.mrf.mxu0 }
 0x1f3   : > { %v745_v49 = vadd.f32 %v744_v43, %v655_v13 }
 0x1f4   : > { %v2884_v50 = vpop.f32.mrf.mxu1  ;;  %v2921_v51 = vpop.f32.mrf.mxu0 }
 0x1f6   : > { %v749_v52 = vpop.f32.mrf.mxu1 }
 0x1f7   : > { %v750_v54 = vadd.f32 %v749_v52, %v660_v28  ;;  %v1136_v55 = vpop.f32.mrf.mxu0 }
 0x1f8   : > { %v2887_v57 = vpop.f32.mrf.mxu1 }
 0x1f9   : > { %v2949_v58 = vpop.f32.mrf.mxu0 }
 0x1fa   : > { %v836_v59 = vpop.f32.mrf.mxu1 }
 0x1fb   : > { %v850_v61 = vadd.f32 %v836_v59, %v740_v38  ;;  %v1141_v62 = vpop.f32.mrf.mxu0 }
 0x1fc   : > { %v2898_v63 = vpop.f32.mrf.mxu1 }
 0x1fd   : > { %v2952_v0 = vpop.f32.mrf.mxu0  ;;  %v950_v1 = vadd.f32 %v936_v29, %v850_v61 }
 0x1fe   : > { %v841_v19 = vpop.f32.mrf.mxu1 }
 0x1ff   : > { %v851_v20 = vadd.f32 %v841_v19, %v745_v49  ;;  %v1146_v2 = vpop.f32.mrf.mxu0 }
 0x200   : > { %v2901_v21 = vpop.f32.mrf.mxu1 }
 0x201   : > { %v2955_v22 = vpop.f32.mrf.mxu0  ;;  %v951_v5 = vadd.f32 %v941_v36, %v851_v20 }
 0x204   : > { %v846_v6 = vpop.f32.mrf.mxu1 }
 0x205   : > { %v852_v7 = vadd.f32 %v846_v6, %v750_v54  ;;  %v1336_v9 = vpop.f32.mrf.mxu0 }
 0x206   : > { %v2904_v10 = vpop.f32.mrf.mxu1 }
 0x207   : > { %v2983_v11 = vpop.f32.mrf.mxu0  ;;  %v952_v12 = vadd.f32 %v946_v44, %v852_v7 }
 0x208   : > { %v1036_v14 = vpop.f32.mrf.mxu1 }
 0x209   : > { %v1050_v15 = vadd.f32 %v1036_v14, %v950_v1  ;;  %v1341_v48 = vpop.f32.mrf.mxu0 }
 0x20a   : > { %v2932_v23 = vpop.f32.mrf.mxu1 }
 0x20b   : > { %v2986_v24 = vpop.f32.mrf.mxu0  ;;  %v1150_v25 = vadd.f32 %v1136_v55, %v1050_v15 }
 0x20c   : > { %v1041_v26 = vpop.f32.mrf.mxu1 }
 0x20d   : > { %v1051_v53 = vadd.f32 %v1041_v26, %v951_v5  ;;  %v1346_v56 = vpop.f32.mrf.mxu0 }
 0x20e   : > { %v2935_v60 = vpop.f32.mrf.mxu1 }
 0x20f   : > { %v2989_v3 = vpop.f32.mrf.mxu0  ;;  %v1151_v4 = vadd.f32 %v1141_v62, %v1051_v53 }
 0x212   : > { %v1046_v8 = vpop.f32.mrf.mxu1 }
 0x213   : > { %v1052_v13 = vadd.f32 %v1046_v8, %v952_v12  ;;  %v1532_v16 = vpop.f32.mrf.mxu0 }
 0x214   : > { %v2938_v17 = vpop.f32.mrf.mxu1 }
 0x215   : > { %v3017_v28 = vpop.f32.mrf.mxu0  ;;  %v1152_v29 = vadd.f32 %v1146_v2, %v1052_v13 }
 0x216   : > { %v1236_v30 = vpop.f32.mrf.mxu1 }
 0x217   : > { %v1250_v31 = vadd.f32 %v1236_v30, %v1150_v25  ;;  %v1537_v32 = vpop.f32.mrf.mxu0 }
 0x218   : > { %v2966_v33 = vpop.f32.mrf.mxu1 }
 0x219   : > { %v3020_v34 = vpop.f32.mrf.mxu0  ;;  %v1350_v35 = vadd.f32 %v1336_v9, %v1250_v31 }
 0x21a   : > { %v1241_v36 = vpop.f32.mrf.mxu1 }
 0x21b   : > { %v1251_v37 = vadd.f32 %v1241_v36, %v1151_v4  ;;  %v1542_v38 = vpop.f32.mrf.mxu0 }
 0x21c   : > { %v2969_v40 = vpop.f32.mrf.mxu1 }
 0x21d   : > { %v3023_v41 = vpop.f32.mrf.mxu0  ;;  %v4098_v27 = vadd.f32 %v1341_v48, %v1251_v37 }
 0x220   : > { %v1246_v43 = vpop.f32.mrf.mxu1 }
 0x221   : > { %v1252_v44 = vadd.f32 %v1246_v43, %v1152_v29  ;;  %v1692_v45 = vpop.f32.mrf.mxu0 }
 0x222   : > { %v2972_v46 = vpop.f32.mrf.mxu1 }
 0x223   : > { %v3051_v49 = vpop.f32.mrf.mxu0  ;;  %v4100_v50 = vadd.f32 %v1346_v56, %v1252_v44 }
 0x224   : > { %v1436_v51 = vpop.f32.mrf.mxu1 }
 0x225   : > { %v4102_v52 = vadd.f32 %v1436_v51, %v1350_v35  ;;  %v1697_v54 = vpop.f32.mrf.mxu0 }
 0x226   : > { %v3000_v55 = vpop.f32.mrf.mxu1 }
 0x227   : > { %v3054_v57 = vpop.f32.mrf.mxu0 }
 0x228   : > { %v1441_v58 = vpop.f32.mrf.mxu1  ;;  %v2634_v57 = vld [vmem:[#allocation8] ss:$0 sm:$0xff] }
 0x229   : > { %v1702_v59 = vpop.f32.mrf.mxu0 }
 0x22a   : > { %v3003_v61 = vpop.f32.mrf.mxu1 }
 0x22b   : > { %v3057_v62 = vpop.f32.mrf.mxu0 }
 0x22e   : > { %v4104_v63 = vpop.f32.mrf.mxu1 }
 0x22f   : > { %v1858_v0 = vpop.f32.mrf.mxu0 }
 0x230   : > { %v3006_v1 = vpop.f32.mrf.mxu1 }
 0x231   : > { %v3085_v19 = vpop.f32.mrf.mxu0 }
 0x232   : > { %v1612_v20 = vpop.f32.mrf.mxu1 }
 0x233   : > { %v1863_v2 = vpop.f32.mrf.mxu0  ;;  %v1613_v60 = vadd.f32 %v1612_v20, %v1532_v16  ;;  %v1451_v20 = vadd.f32 %v1441_v58, %v4098_v27 }
 0x234   : > { %v3034_v21 = vpop.f32.mrf.mxu1 }
 0x235   : > { %v3088_v22 = vpop.f32.mrf.mxu0  ;;  %v1706_v17 = vadd.f32 %v1692_v45, %v1613_v60 }
 0x236   : > { %v1617_v5 = vpop.f32.mrf.mxu1 }
 0x237   : > { %v1868_v6 = vpop.f32.mrf.mxu0  ;;  %v1618_v13 = vadd.f32 %v1617_v5, %v1537_v32 }
 0x238   : > { %v3037_v7 = vpop.f32.mrf.mxu1 }
 0x239   : > { %v3091_v9 = vpop.f32.mrf.mxu0  ;;  %v1707_v35 = vadd.f32 %v1697_v54, %v1618_v13  ;;  %v1460_v54 = vadd.f32 %v2634_v57, %v4102_v52 }
 0x23c   : > { %v1622_v10 = vpop.f32.mrf.mxu1 }
 0x23d   : > { %v2036_v11 = vpop.f32.mrf.mxu0  ;;  %v1623_v34 = vadd.f32 %v1622_v10, %v1542_v38  ;;  %v1463_v10 = vmax.f32 %v1460_v54, 0.0 }
 0x23e   : > { %v3040_v12 = vpop.f32.mrf.mxu1 }
 0x23f   : > { %v3119_v14 = vpop.f32.mrf.mxu0  ;;  %v1708_v46 = vadd.f32 %v1702_v59, %v1623_v34 }
 0x240   : > { %v1775_v15 = vpop.f32.mrf.mxu1 }
 0x241   : > { %v2041_v48 = vpop.f32.mrf.mxu0  ;;  %v1789_v30 = vadd.f32 %v1775_v15, %v1706_v17 }
 0x242   : > { %v3068_v23 = vpop.f32.mrf.mxu1 }
 0x243   : > { %v3122_v24 = vpop.f32.mrf.mxu0  ;;  %v1872_v41 = vadd.f32 %v1858_v0, %v1789_v30 }
 0x244   : > { %v1780_v25 = vpop.f32.mrf.mxu1 }
 0x245   : > { %v2046_v26 = vpop.f32.mrf.mxu0  ;;  %v1790_v40 = vadd.f32 %v1780_v25, %v1707_v35 }
 0x246   : > { %v3071_v53 = vpop.f32.mrf.mxu1 }
 0x247   : > { %v3125_v56 = vpop.f32.mrf.mxu0  ;;  %v1873_v32 = vadd.f32 %v1863_v2, %v1790_v40  ;;  %v1461_v2 = vadd.f32 %v2634_v57, %v1451_v20 }
 0x249   : > { %v1464_v25 = vmax.f32 %v1461_v2, 0.0 }
 0x24a   : > { %v1785_v3 = vpop.f32.mrf.mxu1 }
 0x24b   : > { %v2226_v4 = vpop.f32.mrf.mxu0  ;;  %v1791_v55 = vadd.f32 %v1785_v3, %v1708_v46 }
 0x24c   : > { %v3074_v8 = vpop.f32.mrf.mxu1 }
 0x24d   : > { %v3153_v28 = vpop.f32.mrf.mxu0  ;;  %v1874_v19 = vadd.f32 %v1868_v6, %v1791_v55 }
 0x24e   : > { %v1941_v29 = vpop.f32.mrf.mxu1 }
 0x24f   : > { %v2231_v31 = vpop.f32.mrf.mxu0  ;;  %v1955_v16 = vadd.f32 %v1941_v29, %v1872_v41 }
 0x250   : > { %v3102_v33 = vpop.f32.mrf.mxu1 }
 0x251   : > { %v3156_v36 = vpop.f32.mrf.mxu0  ;;  %v2050_v62 = vadd.f32 %v2036_v11, %v1955_v16  ;;  %v1452_v11 = vadd.f32 %v4104_v63, %v4100_v50  ;;  %v2663_v50 = vsel %vm4090_vm7, 1.0, %v3427_v18  ;;  %v2665_v63 = vsel %vm2268_vm8, 1.0, %v3427_v18 }
 0x252   : > { %v1946_v37 = vpop.f32.mrf.mxu1 }
 0x253   : > { %v2236_v43 = vpop.f32.mrf.mxu0  ;;  %v1956_v61 = vadd.f32 %v1946_v37, %v1873_v32  ;;  %v1462_v53 = vadd.f32 %v2634_v57, %v1452_v11 }
 0x254   : > { %v3105_v44 = vpop.f32.mrf.mxu1 }
 0x255   : > { %v3159_v49 = vpop.f32.mrf.mxu0  ;;  %v2051_v59 = vadd.f32 %v2041_v48, %v1956_v61 }
 0x256   : > { %v1951_v51 = vpop.f32.mrf.mxu1 }
 0x257   : > { %v1957_v21 = vadd.f32 %v1951_v51, %v1874_v19 }
 0x258   : > { %v3108_v45 = vpop.f32.mrf.mxu1 }
 0x259   : > { %v2052_v15 = vadd.f32 %v2046_v26, %v1957_v21 }
 0x25a   : > { %v2131_v1 = vpop.f32.mrf.mxu1 }
 0x25b   : > { %v2145_v38 = vadd.f32 %v2131_v1, %v2050_v62 }
 0x25c   : > { %v3136_v0 = vpop.f32.mrf.mxu1 }
 0x25d   : > { %v2240_v22 = vadd.f32 %v2226_v4, %v2145_v38  ;;  %v1465_v4 = vmax.f32 %v1462_v53, 0.0 }
 0x25e   : > { %v2136_v5 = vpop.f32.mrf.mxu1 }
 0x25f   : > { %v2243_v7 = vadd.f32 %v2634_v57, %v2240_v22  ;;  %v2146_v9 = vadd.f32 %v2136_v5, %v2051_v59 }
 0x260   : > { %v3139_v12 = vpop.f32.mrf.mxu1 }
 0x261   : > { %v2246_v14 = vmax.f32 %v2243_v7, 0.0  ;;  %v2241_v6 = vadd.f32 %v2231_v31, %v2146_v9 }
 0x262   : > { %v2141_v23 = vpop.f32.mrf.mxu1 }
 0x263   : > { %v2249_v52 = vmax.f32 %v1463_v10, %v2246_v14  ;;  %v2244_v24 = vadd.f32 %v2634_v57, %v2241_v6  ;;  %v2147_v27 = vadd.f32 %v2141_v23, %v2052_v15 }
 0x264   : > { %v3142_v58 = vpop.f32.mrf.mxu1 }
 0x265   : > { %v2247_v48 = vmax.f32 %v2244_v24, 0.0  ;;  %v2242_v56 = vadd.f32 %v2236_v43, %v2147_v27 }
 0x267   : > { %v2250_v60 = vmax.f32 %v1464_v25, %v2247_v48  ;;  %v2245_v3 = vadd.f32 %v2634_v57, %v2242_v56 }
 0x269   : > { %v2248_v8 = vmax.f32 %v2245_v3, 0.0 }
 0x26b   : > { %v2251_v13 = vmax.f32 %v1465_v4, %v2248_v8 }
 0x26d   : > { %3160 = vmatprep.subr.mxu1 %v2251_v13  ;;  %3169 = vmatprep.subr.mxu0 %v2251_v13 }
 0x26e   : > { %3161 = vmatpush3.msra.mxu1 %v2251_v13  ;;  %3170 = vmatpush3.msra.mxu0 %v2251_v13 }
 0x26f   : > { %3162 = vmatprep.subr.mxu1 %v2250_v60  ;;  %3171 = vmatprep.subr.mxu0 %v2250_v60 }
 0x270   : > { %3163 = vmatpush3.msra.mxu1 %v2250_v60  ;;  %3172 = vmatpush3.msra.mxu0 %v2250_v60 }
 0x271   : > { %3164 = vmatprep.subr.mxu1 %v2249_v52  ;;  %3173 = vmatprep.subr.mxu0 %v2249_v52 }
 0x272   : > { %3165 = vmatpush3.msra.mxu1 %v2249_v52  ;;  %3174 = vmatpush3.msra.mxu0 %v2249_v52 }
 0x273   : > { %3167 = vmatmul.mubr.msk.f32.vlgmr.msra.gmra.mxu1 %vm2273_vm6, %v2663_v50  ;;  %3176 = vmatmul.mubr.msk.f32.vlgmr.msra.gmra.mxu0 %vm2273_vm6, %v2665_v63 }
 0x333   : > { %v3168_v47 = vpop.f32.mrf.mxu1  ;;  %v3177_v18 = vpop.f32.mrf.mxu0 }
 0x334   : > { %v2437_v39 = vmax.f32 %v3168_v47, %v3177_v18 }
 0x335   : > { %v2346_v42 = vpop.f32.mrf.mxu1  ;;  %v2427_v26 = vpop.f32.mrf.mxu0 }
 0x336   : > { %2441 = vst.msk [vmem:[%s301_s7 + $0x8] sm:$0xf] %vm2440_vm9, %v2437_v39  ;;  %v2436_v17 = vmax.f32 %v2346_v42, %v2427_v26 }
 0x338   : > { %2439 = vst.msk [vmem:[%s301_s7] sm:$0xff] %vm2438_vm10, %v2436_v17 }
 0x339 PF: > { %s18_s22 = sadd.s32 1, %s3419_s22   ;;  %s4152_s18 = smov %s3411_s20 }
 0x33a   : > { %p15_p5 = scmp.ge.s32.totalorder %s18_s22, 26   ;;  %s4153_s19 = smov %s3415_s21 }
 0x33b   : > { %s4154_s20 = smov %s4157_s29  ;;  %s4155_s21 = smov %s4161_s10 }
 0x33c   :  { %17 = sbr.rel (!%p15_p5) target bundleno = 5 (0x5), region = 96 }
 0x341   :  { %2471 = vsyncpa [#allocation4], 1 }
 0x342   :  { %2473 = vsyncpa [#allocation4 + $0x1], 1 }
 0x343   :  { %2474 = vsyncpa [#allocation6], 1 }
 0x344   :  { %2475 = vsyncpa [#allocation9], 1 }

// kernel: net_forward.3
= control target key start
LH: loop header
LB: loop body
LE: loop exit
PB: predicated region body
PF: predicated region fallthrough
CT: control target
= control target key end

     0   :  { %10 = vsyncpa [#allocation4], 0  ;;  %s1331_s18 = smov 0   ;;  %s1580_s0 = inlined_call_operand.vmem [shape: f32[2,9216], index: 0, kind: input, shape index: {}]   ;;  %s1581_s1 = inlined_call_operand.vmem [shape: f32[9216,128], index: 1, kind: input, shape index: {}]   ;;  %s1582_s2 = inlined_call_operand.vmem [shape: f32[1,128], index: 2, kind: input, shape index: {}]   ;;  %s1583_s3 = inlined_call_operand.vmem [shape: f32[128,10], index: 3, kind: input, shape index: {}]   ;;  %s1584_s4 = inlined_call_operand.vmem [shape: f32[1,10], index: 4, kind: input, shape index: {}]   ;;  %s1585_s5 = inlined_call_operand.hbm [shape: f32[2,10], index: 5, kind: output, shape index: {}]  }
   0x1 LB: > { %s1337_s19 = sadd.s32 4294967295, %s1292_s18   ;;  %p975_p0 = scmp.ge.s32.totalorder %s1292_s18, 1  ;;  %s1292_s18 = sphi %s1331_s18, %s16_s18  }
   0x2   : > { %p195_p1 = scmp.lt.s32.totalorder %s1292_s18, 9 }
   0x4   : > { %p196_p2 = pnand %p975_p0, %p195_p1 }
   0x5   : > { %s223_s20 = smul.u32 (!%p196_p2), 9, %s1337_s19  ;;  %p978_p5 = scmp.ne.s32.totalorder (!%p196_p2), %s1337_s19, 0 }
   0x6   : > { %199 = sbr.rel (%p196_p2) target bundleno = 878 (0x36e), region = 40 }
   0x7   : > { %s229_s21 = smul.u32 (!%p196_p2), 144, %s1337_s19  ;;  %p224_p3 = scmp.lt.s32.totalorder (!%p196_p2), %s223_s20, 71 }
   0x9   : > { %p230_p4 = scmp.lt.s32.totalorder (!%p196_p2), %s229_s21, 1151 }
   0xb   : > { %s1587_s20 = smov (!%p224_p3, %s223_s20), 71  ;;  %s1589_s21 = smov (!%p230_p4, %s229_s21), 1151 }
   0xc   : > { %s976_s22 = sshll.u32 %s1587_s20, 1  ;;  %s977_s26 = sshll.u32 %s1589_s21, 3 }
   0xd   : > { %s1346_s25 = scalar_lea.vmem %s1580_s0, %s976_s22  ;;  %s1351_s29 = scalar_lea.vmem %s1581_s1, %s977_s26 }
   0xe   : > { %238 = sbr.rel (%p978_p5) target bundleno = 21 (0x15), region = 44 }
  0x13   : > { %v1294_v0 = vmov 0.0  }
  0x14   : > { %239 = vst [vmem:[#allocation2] sm:$0x3] %v1294_v0 }
  0x15 PF: > { %v275_v1 = vld [vmem:[%s1351_s29 + $0xf8] sm:$0xff]  ;;  %v274_v5 = vld [vmem:[%s1351_s29 + $0xf0] sm:$0xff]  ;;  %v273_v9 = vld [vmem:[%s1351_s29 + $0xe8] sm:$0xff]  ;;  %v1295_v31 = vmov 1983009808   ;;  %v395_v33 = vlaneseq  ;;  %vm1297_vm0 = vmmov 0  }
  0x16   : > { %v307_v2 = vld [vmem:[%s1351_s29 + $0x1f8] sm:$0xff]  ;;  %987 = vmatprep.subr.mxu0 %v275_v1  ;;  %v306_v6 = vld [vmem:[%s1351_s29 + $0x1f0] sm:$0xff]  ;;  %v305_v10 = vld [vmem:[%s1351_s29 + $0x1e8] sm:$0xff]  ;;  %v393_v32 = vunpack.c.l.s4 %v1295_v31  ;;  %p980_p6 = scmp.ne.s32.totalorder %s1337_s19, 7 }
  0x17   : > { %v259_v3 = vld [vmem:[%s1351_s29 + $0x78] sm:$0xff]  ;;  %1022 = vmatprep.subr.mxu1 %v307_v2  ;;  %v258_v7 = vld [vmem:[%s1351_s29 + $0x70] sm:$0xff]  ;;  %v257_v11 = vld [vmem:[%s1351_s29 + $0x68] sm:$0xff]  ;;  %v396_v43 = vshrl.u32 %v395_v33, 7 }
  0x18   : > { %v291_v4 = vld [vmem:[%s1351_s29 + $0x178] sm:$0xff]  ;;  %988 = vmatpush3.msra.mxu0 %v259_v3  ;;  %v290_v8 = vld [vmem:[%s1351_s29 + $0x170] sm:$0xff]  ;;  %v289_v12 = vld [vmem:[%s1351_s29 + $0x168] sm:$0xff]  ;;  %v394_v42 = vunpack.c.0.s8 %v393_v32 }
  0x19   : > { %1023 = vmatpush3.msra.mxu1 %v291_v4  ;;  %989 = vmatprep.subr.mxu0 %v274_v5  ;;  %v272_v13 = vld [vmem:[%s1351_s29 + $0xe0] sm:$0xff]  ;;  %v271_v17 = vld [vmem:[%s1351_s29 + $0xd8] sm:$0xff]  ;;  %v270_v21 = vld [vmem:[%s1351_s29 + $0xd0] sm:$0xff] }
  0x1a   : > { %1024 = vmatprep.subr.mxu1 %v306_v6  ;;  %990 = vmatpush3.msra.mxu0 %v258_v7  ;;  %v304_v14 = vld [vmem:[%s1351_s29 + $0x1e0] sm:$0xff]  ;;  %v303_v18 = vld [vmem:[%s1351_s29 + $0x1d8] sm:$0xff]  ;;  %v302_v22 = vld [vmem:[%s1351_s29 + $0x1d0] sm:$0xff]  ;;  %v1400_v52 = vsub.s32 %v394_v42, %v396_v43 }
  0x1b   : > { %1025 = vmatpush3.msra.mxu1 %v290_v8  ;;  %991 = vmatprep.subr.mxu0 %v273_v9  ;;  %v256_v15 = vld [vmem:[%s1351_s29 + $0x60] sm:$0xff]  ;;  %v255_v19 = vld [vmem:[%s1351_s29 + $0x58] sm:$0xff]  ;;  %v254_v23 = vld [vmem:[%s1351_s29 + $0x50] sm:$0xff] }
  0x1c   : > { %1026 = vmatprep.subr.mxu1 %v305_v10  ;;  %v288_v16 = vld [vmem:[%s1351_s29 + $0x160] sm:$0xff]  ;;  %992 = vmatpush3.msra.mxu0 %v257_v11  ;;  %v287_v20 = vld [vmem:[%s1351_s29 + $0x158] sm:$0xff]  ;;  %v286_v24 = vld [vmem:[%s1351_s29 + $0x150] sm:$0xff] }
  0x1d   : > { %1027 = vmatpush3.msra.mxu1 %v289_v12  ;;  %993 = vmatprep.subr.mxu0 %v272_v13  ;;  %v269_v25 = vld [vmem:[%s1351_s29 + $0xc8] sm:$0xff]  ;;  %v268_v29 = vld [vmem:[%s1351_s29 + $0xc0] sm:$0xff]  ;;  %v267_v36 = vld [vmem:[%s1351_s29 + $0xb8] sm:$0xff] }
  0x1e   : > { %1028 = vmatprep.subr.mxu1 %v304_v14  ;;  %994 = vmatpush3.msra.mxu0 %v256_v15  ;;  %v301_v26 = vld [vmem:[%s1351_s29 + $0x1c8] sm:$0xff]  ;;  %v300_v30 = vld [vmem:[%s1351_s29 + $0x1c0] sm:$0xff]  ;;  %v299_v37 = vld [vmem:[%s1351_s29 + $0x1b8] sm:$0xff] }
  0x1f   : > { %1029 = vmatpush3.msra.mxu1 %v288_v16  ;;  %995 = vmatprep.subr.mxu0 %v271_v17  ;;  %v253_v27 = vld [vmem:[%s1351_s29 + $0x48] sm:$0xff]  ;;  %v252_v34 = vld [vmem:[%s1351_s29 + $0x40] sm:$0xff]  ;;  %v251_v38 = vld [vmem:[%s1351_s29 + $0x38] sm:$0xff] }
  0x20   : > { %1030 = vmatprep.subr.mxu1 %v303_v18  ;;  %996 = vmatpush3.msra.mxu0 %v255_v19  ;;  %v285_v28 = vld [vmem:[%s1351_s29 + $0x148] sm:$0xff]  ;;  %v284_v35 = vld [vmem:[%s1351_s29 + $0x140] sm:$0xff]  ;;  %v283_v39 = vld [vmem:[%s1351_s29 + $0x138] sm:$0xff] }
  0x21   : > { %1031 = vmatpush3.msra.mxu1 %v287_v20  ;;  %997 = vmatprep.subr.mxu0 %v270_v21  ;;  %v266_v40 = vld [vmem:[%s1351_s29 + $0xb0] sm:$0xff]  ;;  %v265_v46 = vld [vmem:[%s1351_s29 + $0xa8] sm:$0xff]  ;;  %v264_v50 = vld [vmem:[%s1351_s29 + $0xa0] sm:$0xff] }
  0x22   : > { %1032 = vmatprep.subr.mxu1 %v302_v22  ;;  %998 = vmatpush3.msra.mxu0 %v254_v23  ;;  %v298_v41 = vld [vmem:[%s1351_s29 + $0x1b0] sm:$0xff]  ;;  %v297_v47 = vld [vmem:[%s1351_s29 + $0x1a8] sm:$0xff]  ;;  %v296_v51 = vld [vmem:[%s1351_s29 + $0x1a0] sm:$0xff] }
  0x23   : > { %1033 = vmatpush3.msra.mxu1 %v286_v24  ;;  %999 = vmatprep.subr.mxu0 %v269_v25  ;;  %v250_v44 = vld [vmem:[%s1351_s29 + $0x30] sm:$0xff]  ;;  %v249_v48 = vld [vmem:[%s1351_s29 + $0x28] sm:$0xff]  ;;  %v248_v53 = vld [vmem:[%s1351_s29 + $0x20] sm:$0xff] }
  0x24   : > { %1034 = vmatprep.subr.mxu1 %v301_v26  ;;  %1000 = vmatpush3.msra.mxu0 %v253_v27  ;;  %v282_v45 = vld [vmem:[%s1351_s29 + $0x130] sm:$0xff]  ;;  %v281_v49 = vld [vmem:[%s1351_s29 + $0x128] sm:$0xff]  ;;  %v280_v54 = vld [vmem:[%s1351_s29 + $0x120] sm:$0xff] }
  0x25   : > { %1035 = vmatpush3.msra.mxu1 %v285_v28  ;;  %1001 = vmatprep.subr.mxu0 %v268_v29  ;;  %v241_v55 = vld [vmem:[%s1346_s25] sm:$0xff]  ;;  %v263_v56 = vld [vmem:[%s1351_s29 + $0x98] sm:$0xff]  ;;  %v262_v61 = vld [vmem:[%s1351_s29 + $0x90] sm:$0xff] }
  0x26   : > { %1036 = vmatprep.subr.mxu1 %v300_v30  ;;  %1002 = vmatpush3.msra.mxu0 %v252_v34  ;;  %v295_v57 = vld [vmem:[%s1351_s29 + $0x198] sm:$0xff]  ;;  %v391_v58 = vcombine.high %v241_v55, %v241_v55  ;;  %v294_v62 = vld [vmem:[%s1351_s29 + $0x190] sm:$0xff]  ;;  %v398_v63 = vrot.slane %v241_v55, %v1400_v52  ;;  %v261_v3 = vld [vmem:[%s1351_s29 + $0x88] sm:$0xff] }
  0x27   : > { %1037 = vmatpush3.msra.mxu1 %v284_v35  ;;  %1003 = vmatprep.subr.mxu0 %v267_v36  ;;  %v247_v59 = vld [vmem:[%s1351_s29 + $0x18] sm:$0xff]  ;;  %v246_v0 = vld [vmem:[%s1351_s29 + $0x10] sm:$0xff]  ;;  %v293_v4 = vld [vmem:[%s1351_s29 + $0x188] sm:$0xff] }
  0x28   : > { %1038 = vmatprep.subr.mxu1 %v299_v37  ;;  %1004 = vmatpush3.msra.mxu0 %v251_v38  ;;  %v279_v60 = vld [vmem:[%s1351_s29 + $0x118] sm:$0xff]  ;;  %v278_v1 = vld [vmem:[%s1351_s29 + $0x110] sm:$0xff]  ;;  %v405_v2 = vrot.slane %v391_v58, %v1400_v52  ;;  %v245_v5 = vld [vmem:[%s1351_s29 + $0x8] sm:$0xff]  ;;  %v406_v9 = vcombine.high %v398_v63, %v398_v63 }
  0x29   : > { %1039 = vmatpush3.msra.mxu1 %v283_v39  ;;  %1005 = vmatprep.subr.mxu0 %v266_v40  ;;  %v277_v6 = vld [vmem:[%s1351_s29 + $0x108] sm:$0xff]  ;;  %v260_v7 = vld [vmem:[%s1351_s29 + $0x80] sm:$0xff]  ;;  %v339_v13 = vld [vmem:[%s1351_s29 + $0x2f8] sm:$0xff] }
  0x2a   : > { %1040 = vmatprep.subr.mxu1 %v298_v41  ;;  %1006 = vmatpush3.msra.mxu0 %v250_v44  ;;  %v292_v8 = vld [vmem:[%s1351_s29 + $0x180] sm:$0xff]  ;;  %v407_v11 = vcombine.high %v405_v2, %v405_v2  ;;  %v371_v14 = vld [vmem:[%s1351_s29 + $0x3f8] sm:$0xff]  ;;  %v338_v17 = vld [vmem:[%s1351_s29 + $0x2f0] sm:$0xff] }
  0x2b   : > { %1041 = vmatpush3.msra.mxu1 %v282_v45  ;;  %1007 = vmatprep.subr.mxu0 %v265_v46  ;;  %v244_v10 = vld [vmem:[%s1351_s29] sm:$0xff]  ;;  %v323_v15 = vld [vmem:[%s1351_s29 + $0x278] sm:$0xff]  ;;  %v370_v18 = vld [vmem:[%s1351_s29 + $0x3f0] sm:$0xff] }
  0x2c   : > { %1042 = vmatprep.subr.mxu1 %v297_v47  ;;  %1008 = vmatpush3.msra.mxu0 %v249_v48  ;;  %v276_v12 = vld [vmem:[%s1351_s29 + $0x100] sm:$0xff]  ;;  %v355_v16 = vld [vmem:[%s1351_s29 + $0x378] sm:$0xff]  ;;  %v322_v19 = vld [vmem:[%s1351_s29 + $0x270] sm:$0xff] }
  0x2d   : > { %1043 = vmatpush3.msra.mxu1 %v281_v49  ;;  %1009 = vmatprep.subr.mxu0 %v264_v50  ;;  %v354_v20 = vld [vmem:[%s1351_s29 + $0x370] sm:$0xff]  ;;  %v337_v21 = vld [vmem:[%s1351_s29 + $0x2e8] sm:$0xff]  ;;  %v336_v25 = vld [vmem:[%s1351_s29 + $0x2e0] sm:$0xff] }
  0x2e   : > { %1044 = vmatprep.subr.mxu1 %v296_v51  ;;  %1010 = vmatpush3.msra.mxu0 %v248_v53  ;;  %v369_v22 = vld [vmem:[%s1351_s29 + $0x3e8] sm:$0xff]  ;;  %v368_v26 = vld [vmem:[%s1351_s29 + $0x3e0] sm:$0xff]  ;;  %v335_v29 = vld [vmem:[%s1351_s29 + $0x2d8] sm:$0xff] }
  0x2f   : > { %1045 = vmatpush3.msra.mxu1 %v280_v54  ;;  %1011 = vmatprep.subr.mxu0 %v263_v56  ;;  %v321_v23 = vld [vmem:[%s1351_s29 + $0x268] sm:$0xff]  ;;  %v320_v27 = vld [vmem:[%s1351_s29 + $0x260] sm:$0xff]  ;;  %v367_v30 = vld [vmem:[%s1351_s29 + $0x3d8] sm:$0xff] }
  0x30   : > { %1046 = vmatprep.subr.mxu1 %v295_v57  ;;  %1012 = vmatpush3.msra.mxu0 %v247_v59  ;;  %v353_v24 = vld [vmem:[%s1351_s29 + $0x368] sm:$0xff]  ;;  %v352_v28 = vld [vmem:[%s1351_s29 + $0x360] sm:$0xff]  ;;  %v319_v31 = vld [vmem:[%s1351_s29 + $0x258] sm:$0xff] }
  0x31   : > { %1047 = vmatpush3.msra.mxu1 %v279_v60  ;;  %1013 = vmatprep.subr.mxu0 %v262_v61  ;;  %v351_v32 = vld [vmem:[%s1351_s29 + $0x358] sm:$0xff]  ;;  %v334_v33 = vld [vmem:[%s1351_s29 + $0x2d0] sm:$0xff]  ;;  %v333_v37 = vld [vmem:[%s1351_s29 + $0x2c8] sm:$0xff] }
  0x32   : > { %1048 = vmatprep.subr.mxu1 %v294_v62  ;;  %1014 = vmatpush3.msra.mxu0 %v246_v0  ;;  %v366_v34 = vld [vmem:[%s1351_s29 + $0x3d0] sm:$0xff]  ;;  %v365_v38 = vld [vmem:[%s1351_s29 + $0x3c8] sm:$0xff]  ;;  %v332_v41 = vld [vmem:[%s1351_s29 + $0x2c0] sm:$0xff] }
  0x33   : > { %1049 = vmatpush3.msra.mxu1 %v278_v1  ;;  %1015 = vmatprep.subr.mxu0 %v261_v3  ;;  %v318_v35 = vld [vmem:[%s1351_s29 + $0x250] sm:$0xff]  ;;  %v317_v39 = vld [vmem:[%s1351_s29 + $0x248] sm:$0xff]  ;;  %v364_v42 = vld [vmem:[%s1351_s29 + $0x3c0] sm:$0xff] }
  0x34   : > { %1050 = vmatprep.subr.mxu1 %v293_v4  ;;  %1016 = vmatpush3.msra.mxu0 %v245_v5  ;;  %v350_v36 = vld [vmem:[%s1351_s29 + $0x350] sm:$0xff]  ;;  %v349_v40 = vld [vmem:[%s1351_s29 + $0x348] sm:$0xff]  ;;  %v316_v43 = vld [vmem:[%s1351_s29 + $0x240] sm:$0xff] }
  0x35   : > { %1051 = vmatpush3.msra.mxu1 %v277_v6  ;;  %1017 = vmatprep.subr.mxu0 %v260_v7  ;;  %v348_v44 = vld [vmem:[%s1351_s29 + $0x340] sm:$0xff]  ;;  %v331_v45 = vld [vmem:[%s1351_s29 + $0x2b8] sm:$0xff]  ;;  %v330_v49 = vld [vmem:[%s1351_s29 + $0x2b0] sm:$0xff] }
  0x36   : > { %1052 = vmatprep.subr.mxu1 %v292_v8  ;;  %1018 = vmatpush3.msra.mxu0 %v244_v10  ;;  %v363_v46 = vld [vmem:[%s1351_s29 + $0x3b8] sm:$0xff]  ;;  %v362_v50 = vld [vmem:[%s1351_s29 + $0x3b0] sm:$0xff]  ;;  %v329_v54 = vld [vmem:[%s1351_s29 + $0x2a8] sm:$0xff] }
  0x37   : > { %505 = vmatprep.mubr.f32.mxu0 %v406_v9  ;;  %1053 = vmatpush3.msra.mxu1 %v276_v12  ;;  %v315_v47 = vld [vmem:[%s1351_s29 + $0x238] sm:$0xff]  ;;  %v314_v51 = vld [vmem:[%s1351_s29 + $0x230] sm:$0xff]  ;;  %v361_v55 = vld [vmem:[%s1351_s29 + $0x3a8] sm:$0xff] }
  0x38   : > { %575 = vmatprep.mubr.f32.mxu1 %v407_v11  ;;  %506 = vmatmul.mubr.f32.vlgmr.msra.gmra.mxu0 %v398_v63  ;;  %v347_v48 = vld [vmem:[%s1351_s29 + $0x338] sm:$0xff]  ;;  %v346_v53 = vld [vmem:[%s1351_s29 + $0x330] sm:$0xff]  ;;  %v313_v56 = vld [vmem:[%s1351_s29 + $0x228] sm:$0xff] }
  0x39   : > { %576 = vmatmul.mubr.f32.vlgmr.msra.gmra.mxu1 %v405_v2  ;;  %1057 = vmatprep.subr.mxu0 %v339_v13  ;;  %v345_v57 = vld [vmem:[%s1351_s29 + $0x328] sm:$0xff]  ;;  %v328_v59 = vld [vmem:[%s1351_s29 + $0x2a0] sm:$0xff]  ;;  %v327_v63 = vld [vmem:[%s1351_s29 + $0x298] sm:$0xff] }
  0x3a   : > { %1092 = vmatprep.subr.mxu1 %v371_v14  ;;  %1058 = vmatpush3.msra.mxu0 %v323_v15  ;;  %v242_v58 = vld [vmem:[%s1346_s25 + $0x8] sm:$0xff]  ;;  %v360_v60 = vld [vmem:[%s1351_s29 + $0x3a0] sm:$0xff]  ;;  %v359_v0 = vld [vmem:[%s1351_s29 + $0x398] sm:$0xff] }
  0x3b   : > { %1093 = vmatpush3.msra.mxu1 %v355_v16  ;;  %1059 = vmatprep.subr.mxu0 %v338_v17  ;;  %v312_v61 = vld [vmem:[%s1351_s29 + $0x220] sm:$0xff]  ;;  %v415_v1 = vrot.slane %v242_v58, %v1400_v52  ;;  %v408_v2 = vcombine.high %v242_v58, %v242_v58  ;;  %v311_v3 = vld [vmem:[%s1351_s29 + $0x218] sm:$0xff]  ;;  %v326_v5 = vld [vmem:[%s1351_s29 + $0x290] sm:$0xff] }
  0x3c   : > { %1094 = vmatprep.subr.mxu1 %v370_v18  ;;  %1060 = vmatpush3.msra.mxu0 %v322_v19  ;;  %v344_v62 = vld [vmem:[%s1351_s29 + $0x320] sm:$0xff]  ;;  %v343_v4 = vld [vmem:[%s1351_s29 + $0x318] sm:$0xff]  ;;  %v358_v6 = vld [vmem:[%s1351_s29 + $0x390] sm:$0xff] }
  0x3d   : > { %1095 = vmatpush3.msra.mxu1 %v354_v20  ;;  %1061 = vmatprep.subr.mxu0 %v337_v21  ;;  %v310_v7 = vld [vmem:[%s1351_s29 + $0x210] sm:$0xff]  ;;  %v325_v9 = vld [vmem:[%s1351_s29 + $0x288] sm:$0xff]  ;;  %v423_v11 = vcombine.high %v415_v1, %v415_v1  ;;  %v422_v12 = vrot.slane %v408_v2, %v1400_v52  ;;  %v324_v14 = vld [vmem:[%s1351_s29 + $0x280] sm:$0xff]  ;;  %v1296_v20 = vmov 0.0  }
  0x3e   : > { %1096 = vmatprep.subr.mxu1 %v369_v22  ;;  %1062 = vmatpush3.msra.mxu0 %v321_v23  ;;  %v342_v8 = vld [vmem:[%s1351_s29 + $0x310] sm:$0xff]  ;;  %v357_v10 = vld [vmem:[%s1351_s29 + $0x388] sm:$0xff]  ;;  %v308_v16 = vld [vmem:[%s1351_s29 + $0x200] sm:$0xff] }
  0x3f   : > { %1097 = vmatpush3.msra.mxu1 %v353_v24  ;;  %1063 = vmatprep.subr.mxu0 %v336_v25  ;;  %v309_v13 = vld [vmem:[%s1351_s29 + $0x208] sm:$0xff]  ;;  %v356_v17 = vld [vmem:[%s1351_s29 + $0x380] sm:$0xff]  ;;  %v424_v18 = vcombine.high %v422_v12, %v422_v12  ;;  %v387_v19 = vld [vmem:[%s1351_s29 + $0x478] sm:$0xff] }
  0x40   : > { %1098 = vmatprep.subr.mxu1 %v368_v26  ;;  %1064 = vmatpush3.msra.mxu0 %v320_v27  ;;  %v341_v15 = vld [vmem:[%s1351_s29 + $0x308] sm:$0xff]  ;;  %v340_v52 = vld [vmem:[%s1351_s29 + $0x300] sm:$0xff]  ;;  %v386_v21 = vld [vmem:[%s1351_s29 + $0x470] sm:$0xff] }
  0x41   : > { %1099 = vmatpush3.msra.mxu1 %v352_v28  ;;  %1065 = vmatprep.subr.mxu0 %v335_v29  ;;  %v385_v22 = vld [vmem:[%s1351_s29 + $0x468] sm:$0xff]  ;;  %v384_v23 = vld [vmem:[%s1351_s29 + $0x460] sm:$0xff]  ;;  %v383_v24 = vld [vmem:[%s1351_s29 + $0x458] sm:$0xff] }
  0x42   : > { %1100 = vmatprep.subr.mxu1 %v367_v30  ;;  %1066 = vmatpush3.msra.mxu0 %v319_v31  ;;  %v382_v25 = vld [vmem:[%s1351_s29 + $0x450] sm:$0xff]  ;;  %v381_v26 = vld [vmem:[%s1351_s29 + $0x448] sm:$0xff]  ;;  %v380_v27 = vld [vmem:[%s1351_s29 + $0x440] sm:$0xff] }
  0x43   : > { %1101 = vmatpush3.msra.mxu1 %v351_v32  ;;  %1067 = vmatprep.subr.mxu0 %v334_v33  ;;  %v379_v28 = vld [vmem:[%s1351_s29 + $0x438] sm:$0xff]  ;;  %v378_v29 = vld [vmem:[%s1351_s29 + $0x430] sm:$0xff]  ;;  %v377_v30 = vld [vmem:[%s1351_s29 + $0x428] sm:$0xff] }
  0x44   : > { %1102 = vmatprep.subr.mxu1 %v366_v34  ;;  %1068 = vmatpush3.msra.mxu0 %v318_v35  ;;  %v376_v31 = vld [vmem:[%s1351_s29 + $0x420] sm:$0xff]  ;;  %v375_v32 = vld [vmem:[%s1351_s29 + $0x418] sm:$0xff]  ;;  %v374_v33 = vld [vmem:[%s1351_s29 + $0x410] sm:$0xff] }
  0x45   : > { %1103 = vmatpush3.msra.mxu1 %v350_v36  ;;  %1069 = vmatprep.subr.mxu0 %v333_v37  ;;  %v373_v34 = vld [vmem:[%s1351_s29 + $0x408] sm:$0xff]  ;;  %v372_v35 = vld [vmem:[%s1351_s29 + $0x400] sm:$0xff]  ;;  %v979_v36 = vld.sshfl [vmem:[%s1346_s25 + $0x10] sm:$0x3 pattern:$0x76325410] }
  0x46   : > { %1104 = vmatprep.subr.mxu1 %v365_v38  ;;  %1070 = vmatpush3.msra.mxu0 %v317_v39 }
  0x47   : > { %1105 = vmatpush3.msra.mxu1 %v349_v40  ;;  %1071 = vmatprep.subr.mxu0 %v332_v41 }
  0x48   : > { %1106 = vmatprep.subr.mxu1 %v364_v42  ;;  %1072 = vmatpush3.msra.mxu0 %v316_v43 }
  0x49   : > { %1107 = vmatpush3.msra.mxu1 %v348_v44  ;;  %1073 = vmatprep.subr.mxu0 %v331_v45 }
  0x4a   : > { %1108 = vmatprep.subr.mxu1 %v363_v46  ;;  %1074 = vmatpush3.msra.mxu0 %v315_v47 }
  0x4b   : > { %1109 = vmatpush3.msra.mxu1 %v347_v48  ;;  %1075 = vmatprep.subr.mxu0 %v330_v49 }
  0x4c   : > { %1110 = vmatprep.subr.mxu1 %v362_v50  ;;  %1076 = vmatpush3.msra.mxu0 %v314_v51 }
  0x4d   : > { %1111 = vmatpush3.msra.mxu1 %v346_v53  ;;  %1077 = vmatprep.subr.mxu0 %v329_v54  ;;  %v240_v53 = vld [vmem:[#allocation2] sm:$0x3] }
  0x4e   : > { %1112 = vmatprep.subr.mxu1 %v361_v55  ;;  %1078 = vmatpush3.msra.mxu0 %v313_v56 }
  0x4f   : > { %1113 = vmatpush3.msra.mxu1 %v345_v57  ;;  %1079 = vmatprep.subr.mxu0 %v328_v59 }
  0x50   : > { %1114 = vmatprep.subr.mxu1 %v360_v60  ;;  %1080 = vmatpush3.msra.mxu0 %v312_v61 }
  0x51   : > { %1115 = vmatpush3.msra.mxu1 %v344_v62  ;;  %1081 = vmatprep.subr.mxu0 %v327_v63 }
  0x52   : > { %1116 = vmatprep.subr.mxu1 %v359_v0  ;;  %1082 = vmatpush3.msra.mxu0 %v311_v3 }
  0x53   : > { %1117 = vmatpush3.msra.mxu1 %v343_v4  ;;  %1083 = vmatprep.subr.mxu0 %v326_v5 }
  0x54   : > { %1118 = vmatprep.subr.mxu1 %v358_v6  ;;  %1084 = vmatpush3.msra.mxu0 %v310_v7 }
  0x55   : > { %1119 = vmatpush3.msra.mxu1 %v342_v8  ;;  %1085 = vmatprep.subr.mxu0 %v325_v9 }
  0x56   : > { %1120 = vmatprep.subr.mxu1 %v357_v10  ;;  %1086 = vmatpush3.msra.mxu0 %v309_v13 }
  0x57   : > { %645 = vmatprep.mubr.f32.mxu0 %v423_v11  ;;  %1087 = vmatprep.subr.mxu0 %v324_v14 }
  0x58   : > { %1121 = vmatpush3.msra.mxu1 %v341_v15  ;;  %1088 = vmatpush3.msra.mxu0 %v308_v16 }
  0x59   : > { %1122 = vmatprep.subr.mxu1 %v356_v17  ;;  %646 = vmatmul.mubr.f32.vlgmr.msra.gmra.mxu0 %v415_v1 }
  0x5a   : > { %1161 = vmatprep.subr.mxu0 %v1296_v20  ;;  %1123 = vmatpush3.msra.mxu1 %v340_v52 }
  0x5b   : > { %715 = vmatprep.mubr.f32.mxu1 %v424_v18  ;;  %1162 = vmatpush3.msra.mxu0 %v387_v19 }
  0x5c   : > { %716 = vmatmul.mubr.f32.vlgmr.msra.gmra.mxu1 %v422_v12  ;;  %1163 = vmatprep.subr.mxu0 %v1296_v20 }
  0x5d   : > { %1193 = vmatprep.mubr.msk.f32.mxu0 %vm1297_vm0, %v1296_v20  ;;  %1164 = vmatpush3.msra.mxu0 %v386_v21 }
  0x5e   : > { %1165 = vmatprep.subr.mxu0 %v1296_v20 }
  0x5f   : > { %1166 = vmatpush3.msra.mxu0 %v385_v22 }
  0x60   : > { %1167 = vmatprep.subr.mxu0 %v1296_v20 }
  0x61   : > { %1168 = vmatpush3.msra.mxu0 %v384_v23 }
  0x62   : > { %1169 = vmatprep.subr.mxu0 %v1296_v20 }
  0x63   : > { %1170 = vmatpush3.msra.mxu0 %v383_v24 }
  0x64   : > { %1171 = vmatprep.subr.mxu0 %v1296_v20 }
  0x65   : > { %1172 = vmatpush3.msra.mxu0 %v382_v25 }
  0x66   : > { %1173 = vmatprep.subr.mxu0 %v1296_v20 }
  0x67   : > { %1174 = vmatpush3.msra.mxu0 %v381_v26 }
  0x68   : > { %1175 = vmatprep.subr.mxu0 %v1296_v20 }
  0x69   : > { %1176 = vmatpush3.msra.mxu0 %v380_v27 }
  0x6a   : > { %1177 = vmatprep.subr.mxu0 %v1296_v20 }
  0x6b   : > { %1178 = vmatpush3.msra.mxu0 %v379_v28 }
  0x6c   : > { %1179 = vmatprep.subr.mxu0 %v1296_v20 }
  0x6d   : > { %1180 = vmatpush3.msra.mxu0 %v378_v29 }
  0x6e   : > { %1181 = vmatprep.subr.mxu0 %v1296_v20 }
  0x6f   : > { %1182 = vmatpush3.msra.mxu0 %v377_v30 }
  0x70   : > { %1183 = vmatprep.subr.mxu0 %v1296_v20 }
  0x71   : > { %1184 = vmatpush3.msra.mxu0 %v376_v31 }
  0x72   : > { %1185 = vmatprep.subr.mxu0 %v1296_v20 }
  0x73   : > { %1186 = vmatpush3.msra.mxu0 %v375_v32 }
  0x74   : > { %1187 = vmatprep.subr.mxu0 %v1296_v20 }
  0x75   : > { %1188 = vmatpush3.msra.mxu0 %v374_v33 }
  0x76   : > { %1189 = vmatprep.subr.mxu0 %v1296_v20 }
  0x77   : > { %1190 = vmatpush3.msra.mxu0 %v373_v34 }
  0x78   : > { %1191 = vmatprep.subr.mxu0 %v1296_v20 }
  0x79   : > { %1192 = vmatpush3.msra.mxu0 %v372_v35 }
  0x7a   : > { %1194 = vmatmul.mubr.f32.vlgmr.msra.gmra.mxu0 %v979_v36 }
  0xf8   : > { %v1019_v37 = vpop.f32.mrf.mxu0 }
  0xf9   : > { %v1054_v38 = vpop.f32.mrf.mxu1 }
  0xfa   : > { %v1020_v39 = vpop.f32.mrf.mxu0 }
  0xfb   : > { %v1055_v41 = vpop.f32.mrf.mxu1  ;;  %v1021_v44 = vadd.f32 %v1020_v39, %v1019_v37 }
  0xfc   : > { %v1056_v45 = vadd.f32 %v1055_v41, %v1054_v38 }
  0xfe   : > { %v578_v48 = vadd.f32 %v1056_v45, %v1021_v44 }
 0x119   : > { %v1089_v40 = vpop.f32.mrf.mxu0 }
 0x11b   : > { %v1090_v42 = vpop.f32.mrf.mxu0 }
 0x11c   : > { %v1124_v43 = vpop.f32.mrf.mxu1  ;;  %v1091_v46 = vadd.f32 %v1090_v42, %v1089_v40 }
 0x11e   : > { %v1125_v47 = vpop.f32.mrf.mxu1  ;;  %v648_v49 = vadd.f32 %v1091_v46, %v578_v48 }
 0x11f   : > { %v1126_v50 = vadd.f32 %v1125_v47, %v1124_v43 }
 0x121   : > { %v718_v51 = vadd.f32 %v1126_v50, %v648_v49 }
 0x13a   : > { %v787_v54 = vpop.f32.mrf.mxu0 }
 0x13b   : > { %v788_v55 = vadd.f32 %v787_v54, %v718_v51  ;;  %796 = sbr.rel (%p980_p6) target bundleno = 863 (0x35f), region = 48 }
 0x13c   : > { %v1195_v56 = vpop.f32.mrf.mxu0 }
 0x13d   : > { %v791_v57 = vadd.f32 %v788_v55, %v240_v53 }
 0x13f   : > { %792 = vst [vmem:[#allocation2] sm:$0x3] %v791_v57 }
 0x140   : > { %v822_v58 = vld [vmem:[%s1583_s3 + $0x78] sm:$0xff]  ;;  %v1298_v59 = vmov 0.0   ;;  %v821_v60 = vld [vmem:[%s1583_s3 + $0x70] sm:$0xff]  ;;  %vm1299_vm1 = vmmov 0   ;;  %v820_v61 = vld [vmem:[%s1583_s3 + $0x68] sm:$0xff]  ;;  %vm900_vm2 = vcmask 74752  }
 0x141   : > { %1196 = vmatprep.subr.mxu0 %v1298_v59  ;;  %1228 = vmatprep.mubr.msk.f32.mxu0 %vm1299_vm1, %v1298_v59  ;;  %v819_v62 = vld [vmem:[%s1583_s3 + $0x60] sm:$0xff]  ;;  %v818_v63 = vld [vmem:[%s1583_s3 + $0x58] sm:$0xff]  ;;  %v817_v0 = vld [vmem:[%s1583_s3 + $0x50] sm:$0xff] }
 0x142   : > { %1197 = vmatpush3.msra.mxu0 %v822_v58  ;;  %v816_v1 = vld [vmem:[%s1583_s3 + $0x48] sm:$0xff]  ;;  %v815_v2 = vld [vmem:[%s1583_s3 + $0x40] sm:$0xff]  ;;  %v814_v3 = vld [vmem:[%s1583_s3 + $0x38] sm:$0xff] }
 0x143   : > { %1198 = vmatprep.subr.mxu0 %v1298_v59  ;;  %v813_v4 = vld [vmem:[%s1583_s3 + $0x30] sm:$0xff]  ;;  %v812_v5 = vld [vmem:[%s1583_s3 + $0x28] sm:$0xff]  ;;  %v811_v6 = vld [vmem:[%s1583_s3 + $0x20] sm:$0xff] }
 0x144   : > { %1199 = vmatpush3.msra.mxu0 %v821_v60  ;;  %v981_v8 = vld [vmem:[%s1582_s2] ss:$0 sm:$0xff]  ;;  %v810_v9 = vld [vmem:[%s1583_s3 + $0x18] sm:$0xff]  ;;  %v809_v10 = vld [vmem:[%s1583_s3 + $0x10] sm:$0xff] }
 0x145   : > { %1200 = vmatprep.subr.mxu0 %v1298_v59  ;;  %v808_v12 = vld [vmem:[%s1583_s3 + $0x8] sm:$0xff]  ;;  %v807_v13 = vld [vmem:[%s1583_s3] sm:$0xff] }
 0x146   : > { %1201 = vmatpush3.msra.mxu0 %v820_v61  ;;  %v797_v7 = vld [vmem:[#allocation2] sm:$0x3] }
 0x147   : > { %1202 = vmatprep.subr.mxu0 %v1298_v59  ;;  %v805_v11 = vadd.f32 %v981_v8, %v797_v7  ;;  %v982_v15 = vld [vmem:[%s1584_s4] ss:$0 sm:$0xff] }
 0x148   : > { %1203 = vmatpush3.msra.mxu0 %v819_v62 }
 0x149   : > { %1204 = vmatprep.subr.mxu0 %v1298_v59  ;;  %v806_v14 = vmax.f32 %v805_v11, 0.0 }
 0x14a   : > { %1205 = vmatpush3.msra.mxu0 %v818_v63 }
 0x14b   : > { %1206 = vmatprep.subr.mxu0 %v1298_v59 }
 0x14c   : > { %1207 = vmatpush3.msra.mxu0 %v817_v0 }
 0x14d   : > { %1208 = vmatprep.subr.mxu0 %v1298_v59 }
 0x14e   : > { %1209 = vmatpush3.msra.mxu0 %v816_v1 }
 0x14f   : > { %1210 = vmatprep.subr.mxu0 %v1298_v59 }
 0x150   : > { %1211 = vmatpush3.msra.mxu0 %v815_v2 }
 0x151   : > { %1212 = vmatprep.subr.mxu0 %v1298_v59 }
 0x152   : > { %1213 = vmatpush3.msra.mxu0 %v814_v3 }
 0x153   : > { %1214 = vmatprep.subr.mxu0 %v1298_v59 }
 0x154   : > { %1215 = vmatpush3.msra.mxu0 %v813_v4 }
 0x155   : > { %1216 = vmatprep.subr.mxu0 %v1298_v59 }
 0x156   : > { %1217 = vmatpush3.msra.mxu0 %v812_v5 }
 0x157   : > { %1218 = vmatprep.subr.mxu0 %v1298_v59 }
 0x158   : > { %1219 = vmatpush3.msra.mxu0 %v811_v6 }
 0x159   : > { %1220 = vmatprep.subr.mxu0 %v1298_v59 }
 0x15a   : > { %1221 = vmatpush3.msra.mxu0 %v810_v9 }
 0x15b   : > { %1222 = vmatprep.subr.mxu0 %v1298_v59 }
 0x15c   : > { %1223 = vmatpush3.msra.mxu0 %v809_v10 }
 0x15d   : > { %1224 = vmatprep.subr.mxu0 %v1298_v59 }
 0x15e   : > { %1225 = vmatpush3.msra.mxu0 %v808_v12 }
 0x15f   : > { %1226 = vmatprep.subr.mxu0 %v1298_v59 }
 0x160   : > { %1227 = vmatpush3.msra.mxu0 %v807_v13 }
 0x161   : > { %1229 = vmatmul.mubr.f32.vlgmr.msra.gmra.mxu0 %v806_v14 }
 0x221   : > { %v896_v16 = vpop.f32.mrf.mxu0 }
 0x222   : > { %v897_v17 = vadd.f32 %v982_v15, %v896_v16 }
 0x223   : > { %v1230_v18 = vpop.f32.mrf.mxu0 }
 0x224   : > { %v901_v52 = vsel %vm900_vm2, %v897_v17, -inf }
 0x225   : > { %902 = vmax.xlane.f32.xlu0 %v901_v52 }
 0x2ae   : > { %v903_v19 = vpop.xlane.xlu0 %902 }
 0x2af   : > { %v904_v20 = vsub.f32 %v897_v17, %v903_v19 }
 0x2b1   : > { %v905_v21 = vmul.f32 1.442695, %v904_v20 }
 0x2b3   : > { %1254 = vpow2.f32 %v905_v21 }
 0x2c0   : > { %v1255_v22 = vpop.eup %1254 }
 0x2c1   : > { %v907_v23 = vsel %vm900_vm2, %v1255_v22, 0.0 }
 0x2c2   : > { %908 = vadd.xlane.f32.xlu0 %v907_v23 }
 0x34b   : > { %v909_v24 = vpop.xlane.xlu0 %908 }
 0x34c   : > { %1256 = vlog2.f32 %v909_v24 }
 0x359   : > { %v1257_v25 = vpop.eup %1256 }
 0x35a   : > { %v911_v26 = vmul.f32 0.6931472, %v1257_v25 }
 0x35c   : > { %v912_v27 = vsub.f32 %v904_v20, %v911_v26 }
 0x35e   : > { %913 = vst.msk [vmem:[#allocation3] sm:$0x3] %vm900_vm2, %v912_v27 }
 0x35f PF: > { %p1235_p7 = scmp.eq.s32.totalorder %s1337_s19, 7  ;;  %s1300_s20 = smov [#allocation3]  }
 0x360   : > { %s921_s21 = sshll.u32 %s1300_s20, 4  ;;  %s922_s21 = int_to_ptr.vmem [resolvable:$true] %s921_s21 }
 0x361   : > { %s1258_s22 = scalar_lea.vmem %s922_s21, 32  ;;  %p1265_p11 = scmp.lt.s32.totalorder %s922_s21, %s922_s21 }
 0x362   : > { %p1259_p8 = scmp.ne.s32.totalorder %s922_s21, %s1258_s22  ;;  %p1266_p12 = scmp.lt.s32.totalorder %s1258_s22, %s1258_s22 }
 0x364   : > { %p1260_p9 = pnand %p1259_p8, %p1235_p7  ;;  %p1267_p13 = por %p1266_p12, %p1265_p11 }
 0x366   : > { %p1261_p10 = pneg %p1260_p9 }
 0x368   : > { %p1268_p0 = pnand %p1267_p13, %p1261_p10 }
 0x36a   : > { %1271 = shalt.err (!%p1268_p0)
}
 0x36b   : > { %1232 = dma.vmem_to_hbm [thread:$0]  (%p1235_p7), %s922_s21, 32, %s1585_s5, [#allocation4]  }
 0x36c   : > { %1287 = dma.done.wait (%p1235_p7), [#allocation4], 32  }
 0x36d   : > { %1289 = vsyncadd (%p1235_p7), [#allocation4], 4294967264 }
 0x36e PF: > { %s16_s18 = sadd.s32 1, %s1292_s18  }
 0x36f   : > { %p13_p1 = scmp.ge.s32.totalorder %s16_s18, 10  }
 0x371   :  { %15 = sbr.rel (!%p13_p1) target bundleno = 1 (0x1), region = 78 }
 0x376   :  { %934 = vsyncpa [#allocation4], 1 }
 0x377   :  { %936 = vsyncpa [#allocation4 + $0x1], 1 }

</bundles_post_ra>
